<compile_context>
chip_gen: v5e
topology: v5e:2x2
jax: 0.10.0
libtpu: 0.0.40
codegen_flags: <defaults>
</compile_context>

<pallas_src>
import functools

import numpy as np
import jax
import jax.numpy as jnp
from jax import lax
from jax.experimental import pallas as pl
from jax.experimental.pallas import tpu as pltpu

EPS = 1e-5


def _bn_affine(h, gamma, beta, inv_count, sel=None):
    """Training-mode batchnorm, single pass. h: (C, R); stats per channel."""
    hm = h if sel is None else h * sel
    s = jnp.sum(hm, axis=1, keepdims=True)
    ss = jnp.sum(hm * hm, axis=1, keepdims=True)
    mu = s * inv_count
    var = ss * inv_count - mu * mu            # biased variance
    scale = gamma * lax.rsqrt(var + EPS)
    shift = beta - mu * scale
    return h * scale + shift


def bottleneck_kernel(offsets, inv_n_full, inv_n_sel, use_sel,
                      x_ref, w1_ref, g1_ref, b1_ref,
                      w2_ref, g2_ref, b2_ref,
                      w3_ref, g3_ref, b3_ref,
                      tmask_ref, smask_ref,
                      o_ref, pbuf_ref, col_ref):
    P = w1_ref.shape[0]
    R = x_ref.shape[1]
    M = (pbuf_ref.shape[1] - R) // 2          # lane-aligned zero margin

    # ---- conv1 (1x1): (P, Cin) @ (Cin, R), fused bn1 + relu ---------------
    h1 = jnp.dot(w1_ref[...], x_ref[...], preferred_element_type=jnp.float32)
    h1 = jnp.maximum(_bn_affine(h1, g1_ref[...], b1_ref[...], inv_n_full), 0.0)

    # ---- conv2 (3x3, pad=1) as ONE im2col matmul --------------------------
    # zero only the two margins + write the interior once (no double store).
    pbuf_ref[:, :M] = jnp.zeros((P, M), jnp.float32)
    pbuf_ref[:, M + R:] = jnp.zeros((P, M), jnp.float32)
    pbuf_ref[:, M:M + R] = h1

    # each tap is a static lane-slice of the flat buffer; border contamination
    # (row / image wrap of the flattened index) is removed by the masks.
    for k, off in enumerate(offsets):          # static python loop, 9 taps
        patch = pbuf_ref[:, M + off:M + off + R]
        col_ref[k * P:(k + 1) * P, :] = patch * tmask_ref[k:k + 1, :]

    sel = smask_ref[...] if use_sel else None  # (1, R) strided-position mask
    h2 = jnp.dot(w2_ref[...], col_ref[...], preferred_element_type=jnp.float32)
    h2 = jnp.maximum(_bn_affine(h2, g2_ref[...], b2_ref[...], inv_n_sel, sel),
                     0.0)

    # ---- conv3 (1x1): (4P, P) @ (P, R), fused bn3 (no relu) ---------------
    h3 = jnp.dot(w3_ref[...], h2, preferred_element_type=jnp.float32)
    o_ref[...] = _bn_affine(h3, g3_ref[...], b3_ref[...], inv_n_sel, sel)


def bottleneck_forward(x_nchw, params, stride=1):
    """x_nchw: (N, Cin, H, W) f32.  params in PyTorch layouts.
    Returns (N, 4*planes, Ho, Wo)."""
    w1, g1, b1, w2, g2, b2, w3, g3, b3 = params
    N, Cin, H, W = x_nchw.shape
    P = w1.shape[0]
    Cout = w3.shape[0]
    R = N * H * W
    Ho = (H + 2 - 3) // stride + 1
    Wo = (W + 2 - 3) // stride + 1

    # -- layout plumbing only: channels -> sublanes, flat N*H*W -> lanes ----
    x2d = jnp.transpose(x_nchw, (1, 0, 2, 3)).reshape(Cin, R).astype(jnp.float32)
    w1m = w1.reshape(P, Cin).astype(jnp.float32)
    w2m = jnp.transpose(w2, (0, 2, 3, 1)).reshape(P, 9 * P).astype(jnp.float32)
    w3m = w3.reshape(Cout, P).astype(jnp.float32)
    g1c = g1.reshape(P, 1).astype(jnp.float32)
    b1c = b1.reshape(P, 1).astype(jnp.float32)
    g2c = g2.reshape(P, 1).astype(jnp.float32)
    b2c = b2.reshape(P, 1).astype(jnp.float32)
    g3c = g3.reshape(Cout, 1).astype(jnp.float32)
    b3c = b3.reshape(Cout, 1).astype(jnp.float32)

    # -- static tap offsets + border / stride masks (host-side numpy) -------
    taps = [(u - 1, v - 1) for u in range(3) for v in range(3)]
    offsets = tuple(di * W + dj for di, dj in taps)
    rr = np.arange(R)
    ii = (rr // W) % H
    jj = rr % W
    tmasks = np.stack([((ii + di >= 0) & (ii + di < H) &
                        (jj + dj >= 0) & (jj + dj < W))
                       for di, dj in taps]).astype(np.float32)       # (9, R)
    smask = (((ii % stride) == 0) & ((jj % stride) == 0)
             ).astype(np.float32)[None, :]                           # (1, R)

    use_sel = stride > 1                        # static specialization
    inv_n_full = 1.0 / float(R)
    inv_n_sel = 1.0 / float(N * Ho * Wo)

    margin = max(128, ((W + 1 + 127) // 128) * 128)   # lane-aligned, >= max|off|

    flops = 2.0 * R * (Cin * P + 9 * P * P + P * Cout)
    bytes_accessed = 4.0 * (R * (Cin + Cout + 10) +
                            Cin * P + 9 * P * P + P * Cout + 6 * (P + Cout))

    out2d = pl.pallas_call(
        functools.partial(bottleneck_kernel, offsets, inv_n_full, inv_n_sel,
                          use_sel),
        out_shape=jax.ShapeDtypeStruct((Cout, R), jnp.float32),
        scratch_shapes=[pltpu.VMEM((P, 2 * margin + R), jnp.float32),  # flat pad
                        pltpu.VMEM((9 * P, R), jnp.float32)],          # im2col
        cost_estimate=pl.CostEstimate(flops=int(flops),
                                      transcendentals=2 * P + Cout,
                                      bytes_accessed=int(bytes_accessed)),
    )(x2d, w1m, g1c, b1c, w2m, g2c, b2c, w3m, g3c, b3c,
      jnp.asarray(tmasks), jnp.asarray(smask))

    out = out2d.reshape(Cout, N, H, W)
    if stride > 1:
        out = out[:, :, ::stride, ::stride]
    return jnp.transpose(out, (1, 0, 2, 3))           # (N, 4P, Ho, Wo)


# ---------------- pure-JAX reference (independent path via lax.conv) -------
def ref_forward(x_nchw, params, stride=1):
    w1, g1, b1, w2, g2, b2, w3, g3, b3 = params

    def bn(y, g, b):
        mu = jnp.mean(y, axis=(0, 2, 3), keepdims=True)
        var = jnp.mean((y - mu) ** 2, axis=(0, 2, 3), keepdims=True)
        return ((y - mu) * lax.rsqrt(var + EPS) * g.reshape(1, -1, 1, 1)
                + b.reshape(1, -1, 1, 1))

    dn = ('NCHW', 'OIHW', 'NCHW')
    hp = lax.Precision.HIGHEST

    y = lax.conv_general_dilated(x_nchw, w1, (1, 1), 'VALID',
                                 dimension_numbers=dn, precision=hp)
    y = jax.nn.relu(bn(y, g1, b1))
    y = lax.conv_general_dilated(y, w2, (stride, stride), ((1, 1), (1, 1)),
                                 dimension_numbers=dn, precision=hp)
    y = jax.nn.relu(bn(y, g2, b2))
    y = lax.conv_general_dilated(y, w3, (1, 1), 'VALID',
                                 dimension_numbers=dn, precision=hp)
    return bn(y, g3, b3)


if __name__ == "__main__":
    # Module config: Bottleneck(inplanes=16, planes=4, stride=1), expansion=4
    inplanes, planes, stride, expansion = 16, 4, 1, 4
    N, H, W = 2, 16, 16

    key = jax.random.PRNGKey(0)
    ks = jax.random.split(key, 10)

    x = jax.random.normal(ks[0], (N, inplanes, H, W), jnp.float32)

    # parameters in PyTorch-native layouts
    w1 = 0.1 * jax.random.normal(ks[1], (planes, inplanes, 1, 1), jnp.float32)
    g1 = 1.0 + 0.1 * jax.random.normal(ks[2], (planes,), jnp.float32)
    b1 = 0.1 * jax.random.normal(ks[3], (planes,), jnp.float32)
    w2 = 0.1 * jax.random.normal(ks[4], (planes, planes, 3, 3), jnp.float32)
    g2 = 1.0 + 0.1 * jax.random.normal(ks[5], (planes,), jnp.float32)
    b2 = 0.1 * jax.random.normal(ks[6], (planes,), jnp.float32)
    w3 = 0.1 * jax.random.normal(ks[7], (planes * expansion, planes, 1, 1),
                                 jnp.float32)
    g3 = 1.0 + 0.1 * jax.random.normal(ks[8], (planes * expansion,), jnp.float32)
    b3 = 0.1 * jax.random.normal(ks[9], (planes * expansion,), jnp.float32)

    params = (w1, g1, b1, w2, g2, b2, w3, g3, b3)

    out = jax.block_until_ready(bottleneck_forward(x, params, stride=stride))
    ref = jax.block_until_ready(ref_forward(x, params, stride=stride))

    Ho = (H + 2 - 3) // stride + 1
    Wo = (W + 2 - 3) // stride + 1
    assert out.shape == (N, planes * expansion, Ho, Wo), out.shape
    err = float(jnp.max(jnp.abs(out - ref)))
    assert jnp.allclose(out, ref, rtol=2e-3, atol=2e-3), err

    print("KERNEL_OK")
</pallas_src>

<mosaic_0001>
module attributes {stable_mosaic.version = 11 : i64} {
  func.func @bottleneck_kernel(%arg0: memref<16x512xf32, #tpu.memory_space<vmem>>, %arg1: memref<4x16xf32, #tpu.memory_space<vmem>>, %arg2: memref<4x1xf32, #tpu.memory_space<vmem>>, %arg3: memref<4x1xf32, #tpu.memory_space<vmem>>, %arg4: memref<4x36xf32, #tpu.memory_space<vmem>>, %arg5: memref<4x1xf32, #tpu.memory_space<vmem>>, %arg6: memref<4x1xf32, #tpu.memory_space<vmem>>, %arg7: memref<16x4xf32, #tpu.memory_space<vmem>>, %arg8: memref<16x1xf32, #tpu.memory_space<vmem>>, %arg9: memref<16x1xf32, #tpu.memory_space<vmem>>, %arg10: memref<9x512xf32, #tpu.memory_space<vmem>>, %arg11: memref<1x512xf32, #tpu.memory_space<vmem>>, %arg12: memref<16x512xf32, #tpu.memory_space<vmem>>, %arg13: memref<4x768xf32, #tpu.memory_space<vmem>>, %arg14: memref<36x512xf32, #tpu.memory_space<vmem>>) attributes {dimension_semantics = [], scalar_prefetch = 0 : i64, scratch_operands = 2 : i64, tpu.core_type = #tpu.core_type<tc>} {
    %c0 = arith.constant 0 : index
    %c0_0 = arith.constant 0 : index
    %0 = vector.load %arg1[%c0, %c0_0] : memref<4x16xf32, #tpu.memory_space<vmem>>, vector<4x16xf32>
    %c0_1 = arith.constant 0 : index
    %c0_2 = arith.constant 0 : index
    %1 = vector.load %arg0[%c0_1, %c0_2] : memref<16x512xf32, #tpu.memory_space<vmem>>, vector<16x512xf32>
    %cst = arith.constant dense<0.000000e+00> : vector<4x512xf32>
    %2 = tpu.matmul %0, %1, %cst {dimension_numbers = #tpu.dot_dimension_numbers<[1], [0], [0], [1], [0, 0, 1, 1], [], []>} : vector<4x16xf32>, vector<16x512xf32>, vector<4x512xf32> -> vector<4x512xf32>
    %c0_3 = arith.constant 0 : index
    %c0_4 = arith.constant 0 : index
    %3 = vector.load %arg2[%c0_3, %c0_4] : memref<4x1xf32, #tpu.memory_space<vmem>>, vector<4x1xf32>
    %c0_5 = arith.constant 0 : index
    %c0_6 = arith.constant 0 : index
    %4 = vector.load %arg3[%c0_5, %c0_6] : memref<4x1xf32, #tpu.memory_space<vmem>>, vector<4x1xf32>
    %cst_7 = arith.constant dense<0.000000e+00> : vector<4xf32>
    %5 = vector.multi_reduction <add>, %2, %cst_7 [1] : vector<4x512xf32> to vector<4xf32>
    %6 = vector.shape_cast %5 : vector<4xf32> to vector<4x1xf32>
    %7 = arith.mulf %2, %2 : vector<4x512xf32>
    %cst_8 = arith.constant dense<0.000000e+00> : vector<4xf32>
    %8 = vector.multi_reduction <add>, %7, %cst_8 [1] : vector<4x512xf32> to vector<4xf32>
    %9 = vector.shape_cast %8 : vector<4xf32> to vector<4x1xf32>
    %cst_9 = arith.constant 0.001953125 : f32
    %10 = vector.broadcast %cst_9 : f32 to vector<4x1xf32>
    %11 = arith.mulf %6, %10 : vector<4x1xf32>
    %cst_10 = arith.constant 0.001953125 : f32
    %12 = vector.broadcast %cst_10 : f32 to vector<4x1xf32>
    %13 = arith.mulf %9, %12 : vector<4x1xf32>
    %14 = arith.mulf %11, %11 : vector<4x1xf32>
    %15 = arith.subf %13, %14 : vector<4x1xf32>
    %cst_11 = arith.constant 9.99999974E-6 : f32
    %16 = vector.broadcast %cst_11 : f32 to vector<4x1xf32>
    %17 = arith.addf %15, %16 : vector<4x1xf32>
    %18 = math.rsqrt %17 : vector<4x1xf32>
    %19 = arith.mulf %3, %18 : vector<4x1xf32>
    %20 = arith.mulf %11, %19 : vector<4x1xf32>
    %21 = arith.subf %4, %20 : vector<4x1xf32>
    %22 = vector.broadcast %19 : vector<4x1xf32> to vector<4x512xf32>
    %23 = arith.mulf %2, %22 : vector<4x512xf32>
    %24 = vector.broadcast %21 : vector<4x1xf32> to vector<4x512xf32>
    %25 = arith.addf %23, %24 : vector<4x512xf32>
    %cst_12 = arith.constant 0.000000e+00 : f32
    %26 = vector.broadcast %cst_12 : f32 to vector<4x512xf32>
    %27 = arith.maximumf %25, %26 : vector<4x512xf32>
    %cst_13 = arith.constant 0.000000e+00 : f32
    %28 = vector.broadcast %cst_13 : f32 to vector<4x128xf32>
    %c0_14 = arith.constant 0 : index
    %c0_15 = arith.constant 0 : index
    %29 = vector.load %arg13[%c0_14, %c0_15] : memref<4x768xf32, #tpu.memory_space<vmem>>, vector<4x128xf32>
    tpu.vector_store %arg13[%c0_14, %c0_15], %28 {strides = array<i32>} : memref<4x768xf32, #tpu.memory_space<vmem>>, vector<4x128xf32>,
    %cst_16 = arith.constant 0.000000e+00 : f32
    %30 = vector.broadcast %cst_16 : f32 to vector<4x128xf32>
    %c0_17 = arith.constant 0 : index
    %c640 = arith.constant 640 : index
    %31 = vector.load %arg13[%c0_17, %c640] : memref<4x768xf32, #tpu.memory_space<vmem>>, vector<4x128xf32>
    tpu.vector_store %arg13[%c0_17, %c640], %30 {strides = array<i32>} : memref<4x768xf32, #tpu.memory_space<vmem>>, vector<4x128xf32>,
    %c0_18 = arith.constant 0 : index
    %c128 = arith.constant 128 : index
    %32 = vector.load %arg13[%c0_18, %c128] : memref<4x768xf32, #tpu.memory_space<vmem>>, vector<4x512xf32>
    tpu.vector_store %arg13[%c0_18, %c128], %27 {strides = array<i32>} : memref<4x768xf32, #tpu.memory_space<vmem>>, vector<4x512xf32>,
    %c0_19 = arith.constant 0 : index
    %c111 = arith.constant 111 : index
    %33 = vector.load %arg13[%c0_19, %c111] : memref<4x768xf32, #tpu.memory_space<vmem>>, vector<4x512xf32>
    %c0_20 = arith.constant 0 : index
    %c0_21 = arith.constant 0 : index
    %34 = vector.load %arg10[%c0_20, %c0_21] : memref<9x512xf32, #tpu.memory_space<vmem>>, vector<1x512xf32>
    %35 = vector.broadcast %34 : vector<1x512xf32> to vector<4x512xf32>
    %36 = arith.mulf %33, %35 : vector<4x512xf32>
    %c0_22 = arith.constant 0 : index
    %c0_23 = arith.constant 0 : index
    %37 = vector.load %arg14[%c0_22, %c0_23] : memref<36x512xf32, #tpu.memory_space<vmem>>, vector<4x512xf32>
    tpu.vector_store %arg14[%c0_22, %c0_23], %36 {strides = array<i32>} : memref<36x512xf32, #tpu.memory_space<vmem>>, vector<4x512xf32>,
    %c0_24 = arith.constant 0 : index
    %c112 = arith.constant 112 : index
    %38 = vector.load %arg13[%c0_24, %c112] : memref<4x768xf32, #tpu.memory_space<vmem>>, vector<4x512xf32>
    %c1 = arith.constant 1 : index
    %c0_25 = arith.constant 0 : index
    %39 = vector.load %arg10[%c1, %c0_25] : memref<9x512xf32, #tpu.memory_space<vmem>>, vector<1x512xf32>
    %40 = vector.broadcast %39 : vector<1x512xf32> to vector<4x512xf32>
    %41 = arith.mulf %38, %40 : vector<4x512xf32>
    %c4 = arith.constant 4 : index
    %c0_26 = arith.constant 0 : index
    %42 = vector.load %arg14[%c4, %c0_26] : memref<36x512xf32, #tpu.memory_space<vmem>>, vector<4x512xf32>
    tpu.vector_store %arg14[%c4, %c0_26], %41 {strides = array<i32>} : memref<36x512xf32, #tpu.memory_space<vmem>>, vector<4x512xf32>,
    %c0_27 = arith.constant 0 : index
    %c113 = arith.constant 113 : index
    %43 = vector.load %arg13[%c0_27, %c113] : memref<4x768xf32, #tpu.memory_space<vmem>>, vector<4x512xf32>
    %c2 = arith.constant 2 : index
    %c0_28 = arith.constant 0 : index
    %44 = vector.load %arg10[%c2, %c0_28] : memref<9x512xf32, #tpu.memory_space<vmem>>, vector<1x512xf32>
    %45 = vector.broadcast %44 : vector<1x512xf32> to vector<4x512xf32>
    %46 = arith.mulf %43, %45 : vector<4x512xf32>
    %c8 = arith.constant 8 : index
    %c0_29 = arith.constant 0 : index
    %47 = vector.load %arg14[%c8, %c0_29] : memref<36x512xf32, #tpu.memory_space<vmem>>, vector<4x512xf32>
    tpu.vector_store %arg14[%c8, %c0_29], %46 {strides = array<i32>} : memref<36x512xf32, #tpu.memory_space<vmem>>, vector<4x512xf32>,
    %c0_30 = arith.constant 0 : index
    %c127 = arith.constant 127 : index
    %48 = vector.load %arg13[%c0_30, %c127] : memref<4x768xf32, #tpu.memory_space<vmem>>, vector<4x512xf32>
    %c3 = arith.constant 3 : index
    %c0_31 = arith.constant 0 : index
    %49 = vector.load %arg10[%c3, %c0_31] : memref<9x512xf32, #tpu.memory_space<vmem>>, vector<1x512xf32>
    %50 = vector.broadcast %49 : vector<1x512xf32> to vector<4x512xf32>
    %51 = arith.mulf %48, %50 : vector<4x512xf32>
    %c12 = arith.constant 12 : index
    %c0_32 = arith.constant 0 : index
    %52 = vector.load %arg14[%c12, %c0_32] : memref<36x512xf32, #tpu.memory_space<vmem>>, vector<4x512xf32>
    tpu.vector_store %arg14[%c12, %c0_32], %51 {strides = array<i32>} : memref<36x512xf32, #tpu.memory_space<vmem>>, vector<4x512xf32>,
    %c0_33 = arith.constant 0 : index
    %c128_34 = arith.constant 128 : index
    %53 = vector.load %arg13[%c0_33, %c128_34] : memref<4x768xf32, #tpu.memory_space<vmem>>, vector<4x512xf32>
    %c4_35 = arith.constant 4 : index
    %c0_36 = arith.constant 0 : index
    %54 = vector.load %arg10[%c4_35, %c0_36] : memref<9x512xf32, #tpu.memory_space<vmem>>, vector<1x512xf32>
    %55 = vector.broadcast %54 : vector<1x512xf32> to vector<4x512xf32>
    %56 = arith.mulf %53, %55 : vector<4x512xf32>
    %c16 = arith.constant 16 : index
    %c0_37 = arith.constant 0 : index
    %57 = vector.load %arg14[%c16, %c0_37] : memref<36x512xf32, #tpu.memory_space<vmem>>, vector<4x512xf32>
    tpu.vector_store %arg14[%c16, %c0_37], %56 {strides = array<i32>} : memref<36x512xf32, #tpu.memory_space<vmem>>, vector<4x512xf32>,
    %c0_38 = arith.constant 0 : index
    %c129 = arith.constant 129 : index
    %58 = vector.load %arg13[%c0_38, %c129] : memref<4x768xf32, #tpu.memory_space<vmem>>, vector<4x512xf32>
    %c5 = arith.constant 5 : index
    %c0_39 = arith.constant 0 : index
    %59 = vector.load %arg10[%c5, %c0_39] : memref<9x512xf32, #tpu.memory_space<vmem>>, vector<1x512xf32>
    %60 = vector.broadcast %59 : vector<1x512xf32> to vector<4x512xf32>
    %61 = arith.mulf %58, %60 : vector<4x512xf32>
    %c20 = arith.constant 20 : index
    %c0_40 = arith.constant 0 : index
    %62 = vector.load %arg14[%c20, %c0_40] : memref<36x512xf32, #tpu.memory_space<vmem>>, vector<4x512xf32>
    tpu.vector_store %arg14[%c20, %c0_40], %61 {strides = array<i32>} : memref<36x512xf32, #tpu.memory_space<vmem>>, vector<4x512xf32>,
    %c0_41 = arith.constant 0 : index
    %c143 = arith.constant 143 : index
    %63 = vector.load %arg13[%c0_41, %c143] : memref<4x768xf32, #tpu.memory_space<vmem>>, vector<4x512xf32>
    %c6 = arith.constant 6 : index
    %c0_42 = arith.constant 0 : index
    %64 = vector.load %arg10[%c6, %c0_42] : memref<9x512xf32, #tpu.memory_space<vmem>>, vector<1x512xf32>
    %65 = vector.broadcast %64 : vector<1x512xf32> to vector<4x512xf32>
    %66 = arith.mulf %63, %65 : vector<4x512xf32>
    %c24 = arith.constant 24 : index
    %c0_43 = arith.constant 0 : index
    %67 = vector.load %arg14[%c24, %c0_43] : memref<36x512xf32, #tpu.memory_space<vmem>>, vector<4x512xf32>
    tpu.vector_store %arg14[%c24, %c0_43], %66 {strides = array<i32>} : memref<36x512xf32, #tpu.memory_space<vmem>>, vector<4x512xf32>,
    %c0_44 = arith.constant 0 : index
    %c144 = arith.constant 144 : index
    %68 = vector.load %arg13[%c0_44, %c144] : memref<4x768xf32, #tpu.memory_space<vmem>>, vector<4x512xf32>
    %c7 = arith.constant 7 : index
    %c0_45 = arith.constant 0 : index
    %69 = vector.load %arg10[%c7, %c0_45] : memref<9x512xf32, #tpu.memory_space<vmem>>, vector<1x512xf32>
    %70 = vector.broadcast %69 : vector<1x512xf32> to vector<4x512xf32>
    %71 = arith.mulf %68, %70 : vector<4x512xf32>
    %c28 = arith.constant 28 : index
    %c0_46 = arith.constant 0 : index
    %72 = vector.load %arg14[%c28, %c0_46] : memref<36x512xf32, #tpu.memory_space<vmem>>, vector<4x512xf32>
    tpu.vector_store %arg14[%c28, %c0_46], %71 {strides = array<i32>} : memref<36x512xf32, #tpu.memory_space<vmem>>, vector<4x512xf32>,
    %c0_47 = arith.constant 0 : index
    %c145 = arith.constant 145 : index
    %73 = vector.load %arg13[%c0_47, %c145] : memref<4x768xf32, #tpu.memory_space<vmem>>, vector<4x512xf32>
    %c8_48 = arith.constant 8 : index
    %c0_49 = arith.constant 0 : index
    %74 = vector.load %arg10[%c8_48, %c0_49] : memref<9x512xf32, #tpu.memory_space<vmem>>, vector<1x512xf32>
    %75 = vector.broadcast %74 : vector<1x512xf32> to vector<4x512xf32>
    %76 = arith.mulf %73, %75 : vector<4x512xf32>
    %c32 = arith.constant 32 : index
    %c0_50 = arith.constant 0 : index
    %77 = vector.load %arg14[%c32, %c0_50] : memref<36x512xf32, #tpu.memory_space<vmem>>, vector<4x512xf32>
    tpu.vector_store %arg14[%c32, %c0_50], %76 {strides = array<i32>} : memref<36x512xf32, #tpu.memory_space<vmem>>, vector<4x512xf32>,
    %c0_51 = arith.constant 0 : index
    %c0_52 = arith.constant 0 : index
    %78 = vector.load %arg4[%c0_51, %c0_52] : memref<4x36xf32, #tpu.memory_space<vmem>>, vector<4x36xf32>
    %c0_53 = arith.constant 0 : index
    %c0_54 = arith.constant 0 : index
    %79 = vector.load %arg14[%c0_53, %c0_54] : memref<36x512xf32, #tpu.memory_space<vmem>>, vector<36x512xf32>
    %cst_55 = arith.constant dense<0.000000e+00> : vector<4x512xf32>
    %80 = tpu.matmul %78, %79, %cst_55 {dimension_numbers = #tpu.dot_dimension_numbers<[1], [0], [0], [1], [0, 0, 1, 1], [], []>} : vector<4x36xf32>, vector<36x512xf32>, vector<4x512xf32> -> vector<4x512xf32>
    %c0_56 = arith.constant 0 : index
    %c0_57 = arith.constant 0 : index
    %81 = vector.load %arg5[%c0_56, %c0_57] : memref<4x1xf32, #tpu.memory_space<vmem>>, vector<4x1xf32>
    %c0_58 = arith.constant 0 : index
    %c0_59 = arith.constant 0 : index
    %82 = vector.load %arg6[%c0_58, %c0_59] : memref<4x1xf32, #tpu.memory_space<vmem>>, vector<4x1xf32>
    %cst_60 = arith.constant dense<0.000000e+00> : vector<4xf32>
    %83 = vector.multi_reduction <add>, %80, %cst_60 [1] : vector<4x512xf32> to vector<4xf32>
    %84 = vector.shape_cast %83 : vector<4xf32> to vector<4x1xf32>
    %85 = arith.mulf %80, %80 : vector<4x512xf32>
    %cst_61 = arith.constant dense<0.000000e+00> : vector<4xf32>
    %86 = vector.multi_reduction <add>, %85, %cst_61 [1] : vector<4x512xf32> to vector<4xf32>
    %87 = vector.shape_cast %86 : vector<4xf32> to vector<4x1xf32>
    %cst_62 = arith.constant 0.001953125 : f32
    %88 = vector.broadcast %cst_62 : f32 to vector<4x1xf32>
    %89 = arith.mulf %84, %88 : vector<4x1xf32>
    %cst_63 = arith.constant 0.001953125 : f32
    %90 = vector.broadcast %cst_63 : f32 to vector<4x1xf32>
    %91 = arith.mulf %87, %90 : vector<4x1xf32>
    %92 = arith.mulf %89, %89 : vector<4x1xf32>
    %93 = arith.subf %91, %92 : vector<4x1xf32>
    %cst_64 = arith.constant 9.99999974E-6 : f32
    %94 = vector.broadcast %cst_64 : f32 to vector<4x1xf32>
    %95 = arith.addf %93, %94 : vector<4x1xf32>
    %96 = math.rsqrt %95 : vector<4x1xf32>
    %97 = arith.mulf %81, %96 : vector<4x1xf32>
    %98 = arith.mulf %89, %97 : vector<4x1xf32>
    %99 = arith.subf %82, %98 : vector<4x1xf32>
    %100 = vector.broadcast %97 : vector<4x1xf32> to vector<4x512xf32>
    %101 = arith.mulf %80, %100 : vector<4x512xf32>
    %102 = vector.broadcast %99 : vector<4x1xf32> to vector<4x512xf32>
    %103 = arith.addf %101, %102 : vector<4x512xf32>
    %cst_65 = arith.constant 0.000000e+00 : f32
    %104 = vector.broadcast %cst_65 : f32 to vector<4x512xf32>
    %105 = arith.maximumf %103, %104 : vector<4x512xf32>
    %c0_66 = arith.constant 0 : index
    %c0_67 = arith.constant 0 : index
    %106 = vector.load %arg7[%c0_66, %c0_67] : memref<16x4xf32, #tpu.memory_space<vmem>>, vector<16x4xf32>
    %cst_68 = arith.constant dense<0.000000e+00> : vector<16x512xf32>
    %107 = tpu.matmul %106, %105, %cst_68 {dimension_numbers = #tpu.dot_dimension_numbers<[1], [0], [0], [1], [0, 0, 1, 1], [], []>} : vector<16x4xf32>, vector<4x512xf32>, vector<16x512xf32> -> vector<16x512xf32>
    %c0_69 = arith.constant 0 : index
    %c0_70 = arith.constant 0 : index
    %108 = vector.load %arg8[%c0_69, %c0_70] : memref<16x1xf32, #tpu.memory_space<vmem>>, vector<16x1xf32>
    %c0_71 = arith.constant 0 : index
    %c0_72 = arith.constant 0 : index
    %109 = vector.load %arg9[%c0_71, %c0_72] : memref<16x1xf32, #tpu.memory_space<vmem>>, vector<16x1xf32>
    %cst_73 = arith.constant dense<0.000000e+00> : vector<16xf32>
    %110 = vector.multi_reduction <add>, %107, %cst_73 [1] : vector<16x512xf32> to vector<16xf32>
    %111 = vector.shape_cast %110 : vector<16xf32> to vector<16x1xf32>
    %112 = arith.mulf %107, %107 : vector<16x512xf32>
    %cst_74 = arith.constant dense<0.000000e+00> : vector<16xf32>
    %113 = vector.multi_reduction <add>, %112, %cst_74 [1] : vector<16x512xf32> to vector<16xf32>
    %114 = vector.shape_cast %113 : vector<16xf32> to vector<16x1xf32>
    %cst_75 = arith.constant 0.001953125 : f32
    %115 = vector.broadcast %cst_75 : f32 to vector<16x1xf32>
    %116 = arith.mulf %111, %115 : vector<16x1xf32>
    %cst_76 = arith.constant 0.001953125 : f32
    %117 = vector.broadcast %cst_76 : f32 to vector<16x1xf32>
    %118 = arith.mulf %114, %117 : vector<16x1xf32>
    %119 = arith.mulf %116, %116 : vector<16x1xf32>
    %120 = arith.subf %118, %119 : vector<16x1xf32>
    %cst_77 = arith.constant 9.99999974E-6 : f32
    %121 = vector.broadcast %cst_77 : f32 to vector<16x1xf32>
    %122 = arith.addf %120, %121 : vector<16x1xf32>
    %123 = math.rsqrt %122 : vector<16x1xf32>
    %124 = arith.mulf %108, %123 : vector<16x1xf32>
    %125 = arith.mulf %116, %124 : vector<16x1xf32>
    %126 = arith.subf %109, %125 : vector<16x1xf32>
    %127 = vector.broadcast %124 : vector<16x1xf32> to vector<16x512xf32>
    %128 = arith.mulf %107, %127 : vector<16x512xf32>
    %129 = vector.broadcast %126 : vector<16x1xf32> to vector<16x512xf32>
    %130 = arith.addf %128, %129 : vector<16x512xf32>
    %c0_78 = arith.constant 0 : index
    %c0_79 = arith.constant 0 : index
    %131 = vector.load %arg12[%c0_78, %c0_79] : memref<16x512xf32, #tpu.memory_space<vmem>>, vector<16x512xf32>
    tpu.vector_store %arg12[%c0_78, %c0_79], %130 {strides = array<i32>} : memref<16x512xf32, #tpu.memory_space<vmem>>, vector<16x512xf32>,
    return
  }
}

</mosaic_0001>

<bundles_post_ra>
// kernel: tpu_custom_call.1
= control target key start
LH: loop header
LB: loop body
LE: loop exit
PB: predicated region body
PF: predicated region fallthrough
CT: control target
= control target key end

     0   :  { %17 = vsyncpa [#allocation5], 0  ;;  %s1775_s0 = inlined_call_operand.vmem [shape: f32[16,512], index: 0, kind: input, shape index: {}]   ;;  %s1776_s1 = inlined_call_operand.vmem [shape: f32[4,16], index: 1, kind: input, shape index: {}]   ;;  %s1777_s2 = inlined_call_operand.vmem [shape: f32[4,1], index: 2, kind: input, shape index: {}]   ;;  %s1778_s3 = inlined_call_operand.vmem [shape: f32[4,1], index: 3, kind: input, shape index: {}]   ;;  %s1779_s4 = inlined_call_operand.vmem [shape: f32[4,36], index: 4, kind: input, shape index: {}]   ;;  %s1780_s5 = inlined_call_operand.vmem [shape: f32[4,1], index: 5, kind: input, shape index: {}]   ;;  %s1781_s6 = inlined_call_operand.vmem [shape: f32[4,1], index: 6, kind: input, shape index: {}]   ;;  %s1782_s7 = inlined_call_operand.vmem [shape: f32[16,4], index: 7, kind: input, shape index: {}]   ;;  %s1783_s8 = inlined_call_operand.vmem [shape: f32[16,1], index: 8, kind: input, shape index: {}]   ;;  %s1784_s9 = inlined_call_operand.vmem [shape: f32[16,1], index: 9, kind: input, shape index: {}]   ;;  %s1785_s10 = inlined_call_operand.hbm [shape: f32[9,512], index: 10, kind: input, shape index: {}]   ;;  %s1786_s11 = inlined_call_operand.vmem [shape: f32[1,512], index: 11, kind: input, shape index: {}]   ;;  %s1787_s12 = inlined_call_operand.hbm [shape: f32[16,512], index: 12, kind: output, shape index: {}]  }
   0x1   :  { %18 = vsyncpa [#allocation6], 0  ;;  %s43_s23 = sshll.u32 %s1785_s10, 4  ;;  %s1312_s24 = smov [#allocation4]   ;;  %s44_s23 = int_to_ptr.hbm [resolvable:$true] %s43_s23 }
   0x2   :  { %s45_s25 = sshll.u32 %s1312_s24, 4  ;;  %s1313_s26 = smov 512   ;;  %s46_s25 = int_to_ptr.vmem [resolvable:$true] %s45_s25 }
   0x3   :  { %s1314_s27 = smov 32  }
   0x4   :  { %51 = dma.hbm_to_vmem [thread:$0]  %s44_s23, 1024, %s46_s25, [#allocation5], %s1313_s26, %s1313_s26, %s1314_s27  }
   0x5   :  { %1308 = dma.done.wait [#allocation5], 1024  }
   0x6   :  { %1309 = vsyncadd [#allocation5], 4294966272  ;;  %v65_v0 = vld [vmem:[%s1775_s0 + $0x30] sm:$0xff]  ;;  %v66_v2 = vld [vmem:[%s1775_s0 + $0x38] sm:$0xff]  ;;  %vm67_vm0 = vcmask 130048   ;;  %vm153_vm1 = vcmask 1043456  }
   0x7   :  { %v61_v1 = vld [vmem:[%s1775_s0 + $0x10] sm:$0xff]  ;;  %125 = vmatpush.msra.mxu2 %v65_v0  ;;  %145 = vmatpush.msra.mxu3 %v66_v2  ;;  %v58_v3 = vld [vmem:[%s1776_s1] sm:$0xf]  ;;  %v64_v5 = vld [vmem:[%s1775_s0 + $0x28] sm:$0xff]  ;;  %s1316_s25 = smov 111   ;;  %v1317_v52 = vmov 0  }
   0x8   :  { %v63_v4 = vld [vmem:[%s1775_s0 + $0x20] sm:$0xff]  ;;  %105 = vmatpush.msra.mxu1 %v64_v5  ;;  %v62_v6 = vld [vmem:[%s1775_s0 + $0x18] sm:$0xff]  ;;  %v60_v8 = vld [vmem:[%s1775_s0 + $0x8] sm:$0xff]  ;;  %1249 = vset.pattern.permute.xlu1 %v1317_v52  ;;  %s1318_s11 = smov 1   ;;  %s1319_s28 = smov 113   ;;  %vm249_vm5 = vcmask 908288  }
   0x9   :  { %85 = vmatpush.msra.mxu0 %v63_v4  ;;  %v59_v7 = vld [vmem:[%s1775_s0] sm:$0xff]  ;;  %126 = vmatpush.msra.mxu2 %v61_v1  ;;  %s1315_s0 = smov 112   ;;  %s1320_s29 = smov 16   ;;  %vm315_vm6 = vcmask 916480   ;;  %vm381_vm7 = vcmask 924672   ;;  %vm447_vm8 = vcmask 1039360  }
   0xa   :  { %146 = vmatpush.msra.mxu3 %v62_v6  ;;  %1213 = vmatmul.msk.f32.vlgmr.msra.gmra.mxu2 %vm67_vm0, %v58_v3  ;;  %v299_v31 = vld [vmem:[#allocation4 + $0x1] ss:$8 sm:$0xf]  ;;  %v233_v32 = vld [vmem:[#allocation4] ss:$8 sm:$0xf] }
   0xb   :  { %1214 = vmatmul.msk.f32.vlgmr.msra.gmra.mxu3 %vm67_vm0, %v58_v3  ;;  %86 = vmatpush.msra.mxu0 %v59_v7  ;;  %v302_v33 = vperm.slane %v299_v31, 1  ;;  %v236_v34 = vperm.slane %v233_v32, 1  ;;  %v304_v35 = vperm.slane %v299_v31, 3  ;;  %v301_v36 = vperm.slane %v299_v31, 0  ;;  %s1321_s30 = smov 127   ;;  %s1322_s10 = smov 17  }
   0xc   :  { %106 = vmatpush.msra.mxu1 %v60_v8  ;;  %1211 = vmatmul.msk.f32.vlgmr.msra.gmra.mxu0 %vm67_vm0, %v58_v3  ;;  %v235_v38 = vperm.slane %v233_v32, 0  ;;  %v303_v40 = vperm.slane %v299_v31, 2  ;;  %v532_v45 = vld [vmem:[#allocation4 + $0x5] ss:$8 sm:$0xf]  ;;  %v238_v46 = vperm.slane %v233_v32, 3 }
   0xd   :  { %1212 = vmatmul.msk.f32.vlgmr.msra.gmra.mxu1 %vm67_vm0, %v58_v3  ;;  %v305_v37 = vrot.slane %v302_v33, 4  ;;  %v239_v39 = vrot.slane %v236_v34, 4  ;;  %v306_v41 = vrot.slane %v304_v35, 4  ;;  %v537_v47 = vperm.slane %v532_v45, 3  ;;  %1250 = vset.pattern.permute.xlu0 %v1317_v52  ;;  %s1323_s15 = smov 15  }
   0xe   :  { %v237_v48 = vperm.slane %v233_v32, 2  ;;  %v240_v49 = vrot.slane %v238_v46, 4  ;;  %v536_v50 = vperm.slane %v532_v45, 2  ;;  %1251 = vset.pattern.permute.xlu2 %v1317_v52  ;;  %v1466_v56 = vld [vmem:[#allocation4 + $0x2] ss:$8 sm:$0xf] }
   0xf   :  { %v307_v42 = vsel %vm153_vm1, %v301_v36, %v305_v37  ;;  %v241_v43 = vsel %vm153_vm1, %v235_v38, %v239_v39  ;;  %v308_v44 = vsel %vm153_vm1, %v303_v40, %v306_v41  ;;  %v539_v51 = vrot.slane %v537_v47, 4  ;;  %v1468_v57 = vld [vmem:[#allocation4 + $0x7] ss:$8 sm:$0xf]  ;;  %v151_v36 = vld [vmem:[%s1777_s2] sm:$0xf] }
  0x10   :  { %243 = vrot.lane.b32.xlu2 %v241_v43, %s1316_s25  ;;  %311 = vrot.lane.b32.xlu1 %v308_v44, %s1315_s0  ;;  %v242_v53 = vsel %vm153_vm1, %v237_v48, %v240_v49  ;;  %v368_v58 = vperm.slane %v1466_v56, 1  ;;  %v664_v59 = vperm.slane %v1468_v57, 1  ;;  %v367_v60 = vperm.slane %v1466_v56, 0  ;;  %v1478_v4 = vld [vmem:[#allocation4 + $0x3] ss:$8 sm:$0xf] }
  0x11   :  { %v541_v54 = vsel %vm153_vm1, %v536_v50, %v539_v51  ;;  %v663_v62 = vperm.slane %v1468_v57, 0  ;;  %v726_v5 = vld [vmem:[#allocation4 + $0x20] ss:$8 sm:$0xf]  ;;  %v434_v8 = vperm.slane %v1478_v4, 1  ;;  %v370_v46 = vperm.slane %v1466_v56, 3 }
  0x12   :  { %v371_v61 = vrot.slane %v368_v58, 4  ;;  %v667_v63 = vrot.slane %v664_v59, 4  ;;  %v729_v40 = vperm.slane %v726_v5, 1  ;;  %v728_v41 = vperm.slane %v726_v5, 0  ;;  %v152_v44 = vld [vmem:[%s1778_s3] sm:$0xf] }
  0x13   :  { %v369_v48 = vperm.slane %v1466_v56, 2  ;;  %v372_v49 = vrot.slane %v370_v46, 4  ;;  %v436_v51 = vperm.slane %v1478_v4, 3  ;;  %v435_v52 = vperm.slane %v1478_v4, 2 }
  0x14   :  { %v373_v1 = vsel %vm153_vm1, %v367_v60, %v371_v61  ;;  %v669_v2 = vsel %vm153_vm1, %v663_v62, %v667_v63  ;;  %v666_v56 = vperm.slane %v1468_v57, 3  ;;  %v665_v61 = vperm.slane %v1468_v57, 2 }
  0x15   :  { %v374_v50 = vsel %vm153_vm1, %v369_v48, %v372_v49  ;;  %vm481_vm9 = vcmask 7168   ;;  %vm414_vm10 = vcmask 121856   ;;  %vm282_vm11 = vcmask 138240  }
  0x16   :  { %v668_v62 = vrot.slane %v666_v56, 4  ;;  %v497_v56 = vld [vmem:[#allocation4 + $0x4] ss:$8 sm:$0xf]  ;;  %vm807_vm12 = vcmask 293888  }
  0x18   :  { %245 = vrot.lane.b32.xlu2 %v242_v53, %s1316_s25  ;;  %v438_v53 = vrot.slane %v436_v51, 4  ;;  %v670_v63 = vsel %vm153_vm1, %v665_v61, %v668_v62 }
  0x20   :  { %375 = vrot.lane.b32.xlu2 %v373_v1, %s1319_s28 }
  0x82   :  { %v312_v1 = vpop.permute.xlu1 %311 }
  0x89   :  { %v1428_v9 = vpop.f32.mrf.mxu0 }
  0x8a   :  { %v1430_v10 = vpop.f32.mrf.mxu1  ;;  %v154_v11 = vsel %vm153_vm1, %v1428_v9, 0.0  ;;  %v163_v12 = vmul.f32 %v1428_v9, %v1428_v9 }
  0x8b   :  { %v155_v13 = vsel %vm153_vm1, %v1430_v10, 0.0  ;;  %v164_v14 = vmul.f32 %v1430_v10, %v1430_v10 }
  0x8c   :  { %v156_v15 = vadd.f32 %v155_v13, %v154_v11  ;;  %v167_v16 = vsel %vm153_vm1, %v163_v12, 0.0  ;;  %v731_v11 = vperm.slane %v726_v5, 3  ;;  %v433_v13 = vperm.slane %v1478_v4, 0 }
  0x8d   :  { %v1441_v17 = vpop.f32.mrf.mxu2  ;;  %v168_v19 = vsel %vm153_vm1, %v164_v14, 0.0  ;;  %v437_v14 = vrot.slane %v434_v8, 4 }
  0x8e   :  { %v1443_v18 = vpop.f32.mrf.mxu3  ;;  %v165_v20 = vmul.f32 %v1441_v17, %v1441_v17  ;;  %v157_v21 = vsel %vm153_vm1, %v1441_v17, 0.0  ;;  %v169_v25 = vadd.f32 %v168_v19, %v167_v16  ;;  %v733_v16 = vrot.slane %v731_v11, 4 }
  0x8f   :  { %v159_v22 = vsel %vm153_vm1, %v1443_v18, 0.0  ;;  %v158_v23 = vadd.f32 %v157_v21, %v156_v15  ;;  %v166_v26 = vmul.f32 %v1443_v18, %v1443_v18  ;;  %v730_v15 = vperm.slane %v726_v5, 2 }
  0x90   :  { %v170_v27 = vsel %vm153_vm1, %v165_v20, 0.0  ;;  %v439_v20 = vsel %vm153_vm1, %v433_v13, %v437_v14 }
  0x91   :  { %v160_v24 = vadd.f32 %v159_v22, %v158_v23  ;;  %v171_v28 = vadd.f32 %v170_v27, %v169_v25  ;;  %v172_v29 = vsel %vm153_vm1, %v166_v26, 0.0  ;;  %v735_v21 = vsel %vm153_vm1, %v730_v15, %v733_v16  ;;  %441 = vrot.lane.b32.xlu2 %v439_v20, %s1321_s30 }
  0x92   :  { %v535_v22 = vperm.slane %v532_v45, 1  ;;  %v534_v23 = vperm.slane %v532_v45, 0 }
  0x93   :  { %161 = vadd.xlane.f32.xlu0 %v160_v24  ;;  %v173_v30 = vadd.f32 %v172_v29, %v171_v28  ;;  %v597_v29 = vld [vmem:[#allocation4 + $0x6] ss:$8 sm:$0xf] }
  0x94   :  { %v538_v24 = vrot.slane %v535_v22, 4  ;;  %v601_v32 = vperm.slane %v597_v29, 2  ;;  %v599_v58 = vperm.slane %v597_v29, 0 }
  0x96   :  { %v540_v26 = vsel %vm153_vm1, %v534_v23, %v538_v24 }
  0x99   :  { %542 = vrot.lane.b32.xlu2 %v540_v26, %s1318_s11 }
  0x9b   :  { %174 = vadd.xlane.f32.xlu0 %v173_v30  ;;  %v602_v30 = vperm.slane %v597_v29, 3 }
  0x9d   :  { %v604_v33 = vrot.slane %v602_v30, 4 }
  0x9f   :  { %v606_v35 = vsel %vm153_vm1, %v601_v32, %v604_v33 }
  0xa1   :  { %609 = vrot.lane.b32.xlu2 %v606_v35, %s1323_s15 }
  0xaf   :  { %309 = vrot.lane.b32.xlu0 %v307_v42, %s1315_s0  ;;  %v732_v42 = vrot.slane %v729_v40, 4 }
  0xb1   :  { %v734_v45 = vsel %vm153_vm1, %v728_v41, %v732_v42 }
  0xb2   :  { %736 = vrot.lane.b32.xlu2 %v734_v45, %s1322_s10 }
  0xb7   :  { %544 = vrot.lane.b32.xlu0 %v541_v54, %s1318_s11  ;;  %v440_v54 = vsel %vm153_vm1, %v435_v52, %v438_v53 }
  0xbf   :  { %671 = vrot.lane.b32.xlu0 %v669_v2, %s1320_s29 }
  0xc7   :  { %738 = vrot.lane.b32.xlu0 %v735_v21, %s1322_s10 }
 0x106   :  { %v162_v55 = vpop.xlane.xlu0 %161 }
 0x107   :  { %v176_v0 = vmul.f32 0.001953125, %v162_v55  ;;  %v600_v55 = vperm.slane %v597_v29, 1 }
 0x109   :  { %v178_v6 = vmul.f32 %v176_v0, %v176_v0  ;;  %v603_v59 = vrot.slane %v600_v55, 4 }
 0x10b   :  { %v605_v60 = vsel %vm153_vm1, %v599_v58, %v603_v59 }
 0x10e   :  { %v175_v3 = vpop.xlane.xlu0 %174 }
 0x10f   :  { %v177_v7 = vmul.f32 0.001953125, %v175_v3  ;;  %v244_v3 = vpop.permute.xlu2 %243 }
 0x111   :  { %v179_v12 = vsub.f32 %v177_v7, %v178_v6 }
 0x113   :  { %v180_v19 = vadd.f32 1e-05, %v179_v12 }
 0x115   :  { %1252 = vrsqrt.f32 %v180_v19  ;;  %vm187_vm3 = vweird.f32 %v180_v19 }
 0x11b   :  { %v1253_v25 = vpop.eup %1252 }
 0x11c   :  { %v182_v27 = vmul.f32 %v1253_v25, %v180_v19  ;;  %vm188_vm2 = vweird.f32 %v1253_v25 }
 0x11d   :  { %vm189_vm4 = vmor %vm187_vm3, %vm188_vm2 }
 0x11e   :  { %v183_v28 = vmul.f32 %v1253_v25, %v182_v27 }
 0x120   :  { %v184_v31 = vmul.f32 0.5, %v183_v28 }
 0x121   :  { %v310_v27 = vpop.permute.xlu0 %309 }
 0x122   :  { %v185_v34 = vsub.f32 1.5, %v184_v31  ;;  %v314_v31 = vrot.slane %v312_v1, 4  ;;  %v313_v32 = vrot.slane %v310_v27, 4 }
 0x124   :  { %v186_v37 = vmul.f32 %v1253_v25, %v185_v34  ;;  %v316_v41 = vsel %vm315_vm6, %v313_v32, %v310_v27 }
 0x126   :  { %v190_v38 = vsel %vm189_vm4, %v1253_v25, %v186_v37 }
 0x127   :  { %v191_v39 = vmul.f32 %v190_v38, %v151_v36  ;;  %v317_v36 = vsel %vm153_vm1, %v313_v32, %v314_v31 }
 0x128   :  { %v318_v42 = vsel %vm315_vm6, %v317_v36, %v312_v1 }
 0x129   :  { %196 = vperm.xlu1 %1249, %v191_v39   ;;  %v192_v43 = vmul.f32 %v191_v39, %v176_v0  ;;  %v1324_v0 = vmov 0.0  }
 0x12a   :  { %216 = vst [vmem:[#allocation2] sm:$0xf] %v1324_v0 }
 0x12b   :  { %v193_v47 = vsub.f32 %v152_v44, %v192_v43  ;;  %217 = vst [vmem:[#allocation2 + $0x14] sm:$0xf] %v1324_v0 }
 0x131   :  { %205 = vperm.xlu1 %1249, %v193_v47  }
 0x139   :  { %377 = vrot.lane.b32.xlu1 %v374_v50, %s1319_s28 }
 0x141   :  { %443 = vrot.lane.b32.xlu1 %v440_v54, %s1321_s30 }
 0x149   :  { %607 = vrot.lane.b32.xlu1 %v605_v60, %s1323_s15 }
 0x151   :  { %673 = vrot.lane.b32.xlu1 %v670_v63, %s1320_s29 }
 0x19b   :  { %v197_v2 = vpop.permute.xlu1 %196 }
 0x19c   :  { %v199_v4 = vmul.f32 %v197_v2, %v1428_v9  ;;  %v200_v5 = vmul.f32 %v197_v2, %v1430_v10  ;;  %v201_v6 = vmul.f32 %v197_v2, %v1441_v17  ;;  %v202_v7 = vmul.f32 %v197_v2, %v1443_v18  ;;  %v246_v10 = vpop.permute.xlu2 %245 }
 0x19d   :  { %v248_v17 = vrot.slane %v246_v10, 4  ;;  %v247_v18 = vrot.slane %v244_v3, 4 }
 0x19f   :  { %v251_v23 = vsel %vm153_vm1, %v247_v18, %v248_v17  ;;  %v250_v24 = vsel %vm249_vm5, %v247_v18, %v244_v3 }
 0x1a0   :  { %v252_v26 = vsel %vm249_vm5, %v251_v23, %v246_v10  ;;  %v530_v10 = vld [vmem:[#allocation2 + $0x14] sm:$0xf] }
 0x1a3   :  { %v206_v57 = vpop.permute.xlu1 %205 }
 0x1a4   :  { %v208_v8 = vadd.f32 %v206_v57, %v199_v4  ;;  %v209_v11 = vadd.f32 %v206_v57, %v200_v5  ;;  %v210_v12 = vadd.f32 %v206_v57, %v201_v6  ;;  %v211_v13 = vadd.f32 %v206_v57, %v202_v7  ;;  %v376_v37 = vpop.permute.xlu2 %375 }
 0x1a5   :  { %v379_v38 = vrot.slane %v376_v37, 4  ;;  %v502_v5 = vperm.slane %v497_v56, 3  ;;  %v500_v57 = vperm.slane %v497_v56, 1 }
 0x1a6   :  { %v213_v14 = vmax.f32 %v209_v11, 0.0  ;;  %v215_v15 = vmax.f32 %v211_v13, 0.0  ;;  %v212_v16 = vmax.f32 %v208_v8, 0.0  ;;  %v214_v19 = vmax.f32 %v210_v12, 0.0 }
 0x1a7   :  { %v382_v59 = vsel %vm381_vm7, %v379_v38, %v376_v37  ;;  %v501_v11 = vperm.slane %v497_v56, 2  ;;  %v504_v12 = vrot.slane %v502_v5, 4  ;;  %v503_v18 = vrot.slane %v500_v57, 4 }
 0x1a8   :  { %v222_v20 = vrot.slane %v213_v14, 4  ;;  %v223_v21 = vrot.slane %v215_v15, 4 }
 0x1aa   :  { %v1517_v22 = vsel %vm153_vm1, %v212_v16, %v222_v20  ;;  %v1520_v9 = vsel %vm153_vm1, %v214_v19, %v223_v21 }
 0x1ab   :  { %228 = vst [vmem:[#allocation2 + $0x4] sm:$0xff] %v1517_v22  ;;  %v378_v35 = vpop.permute.xlu1 %377 }
 0x1ac   :  { %229 = vst [vmem:[#allocation2 + $0xc] sm:$0xff] %v1520_v9  ;;  %v380_v39 = vrot.slane %v378_v35, 4  ;;  %v442_v58 = vpop.permute.xlu2 %441 }
 0x1ad   :  { %v445_v60 = vrot.slane %v442_v58, 4 }
 0x1ae   :  { %v383_v49 = vsel %vm153_vm1, %v379_v38, %v380_v39 }
 0x1af   :  { %v384_v53 = vsel %vm381_vm7, %v383_v49, %v378_v35  ;;  %v448_v8 = vsel %vm447_vm8, %v445_v60, %v442_v58 }
 0x1b2   :  { %v1526_v25 = vld [vmem:[#allocation2] sm:$0xff] }
 0x1b3   :  { %v1529_v28 = vld [vmem:[#allocation2 + $0x8] sm:$0xff]  ;;  %v232_v29 = vld [vmem:[#allocation2 + $0x10] sm:$0xf]  ;;  %v256_v30 = vmul.f32 %v250_v24, %v1526_v25  ;;  %v322_v48 = vmul.f32 %v316_v41, %v1526_v25  ;;  %v444_v51 = vpop.permute.xlu1 %443  ;;  %v388_v3 = vmul.f32 %v382_v59, %v1526_v25  ;;  %v454_v23 = vmul.f32 %v448_v8, %v1526_v25  ;;  %v545_v24 = vpop.permute.xlu0 %544  ;;  %v659_v59 = vld [vmem:[#allocation2 + $0x14] sm:$0xf] }
 0x1b4   :  { %v257_v33 = vmul.f32 %v252_v26, %v1529_v28  ;;  %v258_v34 = vmul.f32 %v248_v17, %v232_v29  ;;  %v297_v40 = vld [vmem:[#allocation2 + $0x10] sm:$0xf]  ;;  %v323_v43 = vmul.f32 %v318_v42, %v1529_v28  ;;  %v446_v55 = vrot.slane %v444_v51, 4  ;;  %v543_v20 = vpop.permute.xlu2 %542 }
 0x1b5   :  { %262 = vst [vmem:[#allocation1] ss:$2 sm:$0xff] %v256_v30  ;;  %v324_v45 = vmul.f32 %v314_v31, %v297_v40  ;;  %v363_v54 = vld [vmem:[#allocation2 + $0x10] sm:$0xf]  ;;  %v389_v61 = vmul.f32 %v384_v53, %v1529_v28  ;;  %v499_v17 = vperm.slane %v497_v56, 0  ;;  %v506_v29 = vsel %vm153_vm1, %v501_v11, %v504_v12 }
 0x1b6   :  { %264 = vst [vmem:[#allocation1 + $0x10] ss:$2 sm:$0xff] %v257_v33  ;;  %v390_v62 = vmul.f32 %v380_v39, %v363_v54  ;;  %v449_v1 = vsel %vm153_vm1, %v445_v60, %v446_v55  ;;  %v429_v13 = vld [vmem:[#allocation2 + $0x10] sm:$0xf]  ;;  %v546_v30 = vrot.slane %v543_v20, 4  ;;  %v510_v33 = vmul.f32 %v506_v29, %v1520_v9 }
 0x1b7   :  { %266 = vst [vmem:[#allocation1 + $0x20] ss:$2 sm:$0xff] %v258_v34  ;;  %v450_v7 = vsel %vm447_vm8, %v449_v1, %v444_v51  ;;  %v456_v15 = vmul.f32 %v446_v55, %v429_v13  ;;  %v505_v32 = vsel %vm153_vm1, %v499_v17, %v503_v18  ;;  %v595_v39 = vld [vmem:[#allocation2 + $0x14] sm:$0xf] }
 0x1b8   :  { %v455_v14 = vmul.f32 %v450_v7, %v1529_v28  ;;  %v547_v28 = vrot.slane %v545_v24, 4  ;;  %v509_v38 = vmul.f32 %v505_v32, %v1517_v22  ;;  %v724_v13 = vld [vmem:[#allocation2 + $0x14] sm:$0xf] }
 0x1ba   :  { %v556_v31 = vmul.f32 %v547_v28, %v530_v10  ;;  %v549_v25 = vsel %vm153_vm1, %v546_v30, %v547_v28 }
 0x1bb   :  { %v608_v34 = vpop.permute.xlu1 %607 }
 0x1bc   :  { %v1537_v44 = vld.sshfl [vmem:[#allocation1] sm:$0xff pattern:$0x75316420]  ;;  %v1544_v52 = vld.sshfl [vmem:[#allocation1 + $0x8] sm:$0xff pattern:$0x75316420]  ;;  %v610_v40 = vpop.permute.xlu2 %609 }
 0x1bd   :  { %v270_v46 = vld.sshfl [vmem:[#allocation1 + $0x18] sm:$0xff pattern:$0x75316420]  ;;  %v269_v47 = vld.sshfl [vmem:[#allocation1 + $0x10] sm:$0xff pattern:$0x75316420] }
 0x1be   :  { %v271_v50 = vld.sshfl [vmem:[#allocation1 + $0x20] sm:$0xff pattern:$0x75316420]  ;;  %278 = vrot.lane.b32.xlu0 %v270_v46, %s1322_s10  ;;  %276 = vrot.lane.b32.xlu2 %v269_v47, %s1322_s10  ;;  %331 = vst [vmem:[#allocation1 + $0x11] ss:$2 sm:$0xff] %v323_v43  ;;  %v550_v43 = vsel %vm481_vm9, %v549_v25, %v545_v24  ;;  %v611_v46 = vrot.slane %v608_v34, 4 }
 0x1bf   :  { %280 = vrot.lane.b32.xlu1 %v271_v50, %s1322_s10  ;;  %333 = vst [vmem:[#allocation1 + $0x21] ss:$2 sm:$0xff] %v324_v45  ;;  %v612_v45 = vrot.slane %v610_v40, 4  ;;  %v555_v49 = vmul.f32 %v550_v43, %v1520_v9  ;;  %v548_v50 = vsel %vm481_vm9, %v546_v30, %v543_v20 }
 0x1c0   :  { %329 = vst [vmem:[#allocation1 + $0x1] ss:$2 sm:$0xff] %v322_v48  ;;  %v672_v48 = vpop.permute.xlu0 %671  ;;  %v554_v60 = vmul.f32 %v548_v50, %v1517_v22  ;;  %v613_v5 = vsel %vm414_vm10, %v611_v46, %v608_v34 }
 0x1c1   :  { %v621_v47 = vmul.f32 %v612_v45, %v595_v39  ;;  %v614_v54 = vsel %vm153_vm1, %v611_v46, %v612_v45  ;;  %v675_v1 = vrot.slane %v672_v48, 4 }
 0x1c3   :  { %v674_v55 = vpop.permute.xlu1 %673  ;;  %v677_v18 = vsel %vm67_vm0, %v675_v1, %v672_v48 }
 0x1c4   :  { %v737_v12 = vpop.permute.xlu2 %736  ;;  %v683_v28 = vmul.f32 %v677_v18, %v1517_v22 }
 0x1c5   :  { %v337_v63 = vld.sshfl [vmem:[#allocation1 + $0x18] sm:$0xff pattern:$0x75316420]  ;;  %v336_v0 = vld.sshfl [vmem:[#allocation1 + $0x10] sm:$0xff pattern:$0x75316420] }
 0x1c6   :  { %345 = vrot.lane.b32.xlu2 %v337_v63, %s1320_s29  ;;  %396 = vst [vmem:[#allocation1 + $0x10] ss:$2 sm:$0xff] %v389_v61  ;;  %v338_v2 = vld.sshfl [vmem:[#allocation1 + $0x20] sm:$0xff pattern:$0x75316420]  ;;  %v615_v61 = vsel %vm414_vm10, %v614_v54, %v610_v40 }
 0x1c7   :  { %343 = vrot.lane.b32.xlu1 %v336_v0, %s1320_s29  ;;  %398 = vst [vmem:[#allocation1 + $0x20] ss:$2 sm:$0xff] %v390_v62  ;;  %v1553_v4 = vld.sshfl [vmem:[#allocation1] sm:$0xff pattern:$0x75316420]  ;;  %v676_v62 = vrot.slane %v674_v55, 4 }
 0x1c8   :  { %v1555_v6 = vld.sshfl [vmem:[#allocation1 + $0x8] sm:$0xff pattern:$0x75316420] }
 0x1c9   :  { %394 = vst [vmem:[#allocation1] ss:$2 sm:$0xff] %v388_v3  ;;  %v685_v0 = vmul.f32 %v676_v62, %v659_v59  ;;  %v739_v3 = vpop.permute.xlu0 %738  ;;  %v678_v8 = vsel %vm153_vm1, %v675_v1, %v676_v62 }
 0x1cd   :  { %v402_v16 = vld.sshfl [vmem:[#allocation1 + $0x18] sm:$0xff pattern:$0x75316420]  ;;  %v401_v19 = vld.sshfl [vmem:[#allocation1 + $0x10] sm:$0xff pattern:$0x75316420] }
 0x1ce   :  { %347 = vrot.lane.b32.xlu2 %v338_v2, %s1320_s29  ;;  %410 = vrot.lane.b32.xlu0 %v402_v16, %s1323_s15  ;;  %v403_v21 = vld.sshfl [vmem:[#allocation1 + $0x20] sm:$0xff pattern:$0x75316420]  ;;  %463 = vst [vmem:[#allocation1 + $0x11] ss:$2 sm:$0xff] %v455_v14  ;;  %v620_v2 = vmul.f32 %v615_v61, %v1520_v9  ;;  %v741_v14 = vrot.slane %v739_v3, 4  ;;  %v679_v16 = vsel %vm67_vm0, %v678_v8, %v674_v55 }
 0x1cf   :  { %465 = vst [vmem:[#allocation1 + $0x21] ss:$2 sm:$0xff] %v456_v15  ;;  %v619_v15 = vmul.f32 %v613_v5, %v1517_v22  ;;  %v684_v17 = vmul.f32 %v679_v16, %v1520_v9 }
 0x1d0   :  { %v400_v26 = vld.sshfl [vmem:[#allocation1 + $0x8] sm:$0xff pattern:$0x75316420]  ;;  %v399_v27 = vld.sshfl [vmem:[#allocation1] sm:$0xff pattern:$0x75316420]  ;;  %v750_v10 = vmul.f32 %v741_v14, %v724_v13 }
 0x1d1   :  { %406 = vrot.lane.b32.xlu1 %v400_v26, %s1323_s15  ;;  %461 = vst [vmem:[#allocation1 + $0x1] ss:$2 sm:$0xff] %v454_v23 }
 0x1d5   :  { %v468_v35 = vld.sshfl [vmem:[#allocation1 + $0x10] sm:$0xff pattern:$0x75316420]  ;;  %v469_v36 = vld.sshfl [vmem:[#allocation1 + $0x18] sm:$0xff pattern:$0x75316420] }
 0x1d6   :  { %412 = vrot.lane.b32.xlu0 %v403_v21, %s1323_s15  ;;  %408 = vrot.lane.b32.xlu2 %v401_v19, %s1323_s15  ;;  %515 = vst [vmem:[#allocation1 + $0x10] ss:$2 sm:$0xff] %v510_v33  ;;  %v470_v37 = vld.sshfl [vmem:[#allocation1 + $0x20] sm:$0xff pattern:$0x75316420]  ;;  %v740_v21 = vrot.slane %v737_v12, 4 }
 0x1d7   :  { %565 = vst [vmem:[#allocation1 + $0x21] ss:$2 sm:$0xff] %v556_v31 }
 0x1d8   :  { %v1571_v41 = vld.sshfl [vmem:[#allocation1] sm:$0xff pattern:$0x75316420]  ;;  %v1573_v42 = vld.sshfl [vmem:[#allocation1 + $0x8] sm:$0xff pattern:$0x75316420]  ;;  %v743_v26 = vsel %vm153_vm1, %v740_v21, %v741_v14  ;;  %v742_v33 = vsel %vm282_vm11, %v740_v21, %v737_v12 }
 0x1d9   :  { %475 = vrot.lane.b32.xlu1 %v468_v35, %s1318_s11  ;;  %513 = vst [vmem:[#allocation1] ss:$2 sm:$0xff] %v509_v38  ;;  %v744_v29 = vsel %vm282_vm11, %v743_v26, %v739_v3 }
 0x1da   :  { %v749_v32 = vmul.f32 %v744_v29, %v1520_v9 }
 0x1dd   :  { %v518_v51 = vld.sshfl [vmem:[#allocation1 + $0x10] sm:$0xff pattern:$0x75316420]  ;;  %v519_v53 = vld.sshfl [vmem:[#allocation1 + $0x18] sm:$0xff pattern:$0x75316420] }
 0x1de   :  { %477 = vrot.lane.b32.xlu2 %v469_v36, %s1318_s11  ;;  %404 = vrot.lane.b32.xlu0 %v399_v27, %s1323_s15  ;;  %v570_v58 = vld.sshfl [vmem:[#allocation1 + $0x20] sm:$0xff pattern:$0x75316420]  ;;  %563 = vst [vmem:[#allocation1 + $0x11] ss:$2 sm:$0xff] %v555_v49  ;;  %v748_v36 = vmul.f32 %v742_v33, %v1517_v22 }
 0x1df   :  { %629 = vst [vmem:[#allocation1 + $0x20] ss:$2 sm:$0xff] %v621_v47 }
 0x1e0   :  { %526 = vst [vmem:[#allocation3 + $0x28] sm:$0xf] %v518_v51  ;;  %v516_v56 = vld.sshfl [vmem:[#allocation1] sm:$0xff pattern:$0x75316420] }
 0x1e1   :  { %479 = vrot.lane.b32.xlu1 %v470_v37, %s1318_s11  ;;  %527 = vst [vmem:[#allocation3 + $0x40] sm:$0xf] %v519_v53  ;;  %v517_v63 = vld.sshfl [vmem:[#allocation1 + $0x8] sm:$0xff pattern:$0x75316420] }
 0x1e2   :  { %561 = vst [vmem:[#allocation1 + $0x1] ss:$2 sm:$0xff] %v554_v60 }
 0x1e3   :  { %524 = vst [vmem:[#allocation3 + $0x8] sm:$0xf] %v516_v56 }
 0x1e4   :  { %525 = vst [vmem:[#allocation3 + $0x88] sm:$0xf] %v517_v63 }
 0x1e5   :  { %v568_v7 = vld.sshfl [vmem:[#allocation1 + $0x10] sm:$0xff pattern:$0x75316420]  ;;  %v569_v57 = vld.sshfl [vmem:[#allocation1 + $0x18] sm:$0xff pattern:$0x75316420] }
 0x1e6   :  { %579 = vrot.lane.b32.xlu0 %v570_v58, %s1321_s30  ;;  %v634_v11 = vld.sshfl [vmem:[#allocation1 + $0x20] sm:$0xff pattern:$0x75316420]  ;;  %575 = vrot.lane.b32.xlu2 %v568_v7, %s1321_s30  ;;  %627 = vst [vmem:[#allocation1 + $0x10] ss:$2 sm:$0xff] %v620_v2 }
 0x1e7   :  { %694 = vst [vmem:[#allocation1 + $0x21] ss:$2 sm:$0xff] %v685_v0 }
 0x1e9   :  { %643 = vrot.lane.b32.xlu1 %v634_v11, %s1319_s28  ;;  %v566_v19 = vld.sshfl [vmem:[#allocation1] sm:$0xff pattern:$0x75316420]  ;;  %v567_v20 = vld.sshfl [vmem:[#allocation1 + $0x8] sm:$0xff pattern:$0x75316420] }
 0x1ea   :  { %625 = vst [vmem:[#allocation1] ss:$2 sm:$0xff] %v619_v15 }
 0x1ed   :  { %v633_v23 = vld.sshfl [vmem:[#allocation1 + $0x18] sm:$0xff pattern:$0x75316420]  ;;  %v632_v24 = vld.sshfl [vmem:[#allocation1 + $0x10] sm:$0xff pattern:$0x75316420] }
 0x1ee   :  { %577 = vrot.lane.b32.xlu0 %v569_v57, %s1321_s30  ;;  %571 = vrot.lane.b32.xlu2 %v566_v19, %s1321_s30  ;;  %v699_v27 = vld.sshfl [vmem:[#allocation1 + $0x20] sm:$0xff pattern:$0x75316420]  ;;  %692 = vst [vmem:[#allocation1 + $0x11] ss:$2 sm:$0xff] %v684_v17 }
 0x1ef   :  { %758 = vst [vmem:[#allocation1 + $0x20] ss:$2 sm:$0xff] %v750_v10 }
 0x1f1   :  { %641 = vrot.lane.b32.xlu1 %v633_v23, %s1319_s28  ;;  %v630_v30 = vld.sshfl [vmem:[#allocation1] sm:$0xff pattern:$0x75316420]  ;;  %v631_v31 = vld.sshfl [vmem:[#allocation1 + $0x8] sm:$0xff pattern:$0x75316420] }
 0x1f2   :  { %690 = vst [vmem:[#allocation1 + $0x1] ss:$2 sm:$0xff] %v683_v28 }
 0x1f5   :  { %v698_v34 = vld.sshfl [vmem:[#allocation1 + $0x18] sm:$0xff pattern:$0x75316420]  ;;  %v697_v35 = vld.sshfl [vmem:[#allocation1 + $0x10] sm:$0xff pattern:$0x75316420] }
 0x1f6   :  { %573 = vrot.lane.b32.xlu0 %v567_v20, %s1321_s30  ;;  %708 = vrot.lane.b32.xlu2 %v699_v27, %s1315_s0  ;;  %756 = vst [vmem:[#allocation1 + $0x10] ss:$2 sm:$0xff] %v749_v32  ;;  %v763_v9 = vld.sshfl [vmem:[#allocation1 + $0x20] sm:$0xff pattern:$0x75316420] }
 0x1f9   :  { %635 = vrot.lane.b32.xlu1 %v630_v30, %s1319_s28  ;;  %v696_v25 = vld.sshfl [vmem:[#allocation1 + $0x8] sm:$0xff pattern:$0x75316420]  ;;  %v695_v37 = vld.sshfl [vmem:[#allocation1] sm:$0xff pattern:$0x75316420] }
 0x1fa   :  { %754 = vst [vmem:[#allocation1] ss:$2 sm:$0xff] %v748_v36 }
 0x1fd   :  { %v762_v38 = vld.sshfl [vmem:[#allocation1 + $0x18] sm:$0xff pattern:$0x75316420]  ;;  %v761_v22 = vld.sshfl [vmem:[#allocation1 + $0x10] sm:$0xff pattern:$0x75316420] }
 0x1fe   :  { %637 = vrot.lane.b32.xlu2 %v631_v31, %s1319_s28  ;;  %639 = vrot.lane.b32.xlu0 %v632_v24, %s1319_s28 }
 0x201   :  { %772 = vrot.lane.b32.xlu1 %v763_v9, %s1316_s25  ;;  %v759_v40 = vld.sshfl [vmem:[#allocation1] sm:$0xff pattern:$0x75316420]  ;;  %v760_v43 = vld.sshfl [vmem:[#allocation1 + $0x8] sm:$0xff pattern:$0x75316420] }
 0x206   :  { %706 = vrot.lane.b32.xlu0 %v698_v34, %s1315_s0  ;;  %704 = vrot.lane.b32.xlu2 %v697_v35, %s1315_s0 }
 0x209   :  { %702 = vrot.lane.b32.xlu1 %v696_v25, %s1315_s0 }
 0x20e   :  { %700 = vrot.lane.b32.xlu0 %v695_v37, %s1315_s0  ;;  %770 = vrot.lane.b32.xlu2 %v762_v38, %s1316_s25 }
 0x211   :  { %768 = vrot.lane.b32.xlu1 %v761_v22, %s1316_s25 }
 0x216   :  { %473 = vrot.lane.b32.xlu0 %v1573_v42, %s1318_s11  ;;  %471 = vrot.lane.b32.xlu2 %v1571_v41, %s1318_s11 }
 0x218   :  { %v1620_v39 = vpop.permute.xlu2 %276 }
 0x219   :  { %272 = vrot.lane.b32.xlu1 %v1537_v44, %s1322_s10 }
 0x21e   :  { %764 = vrot.lane.b32.xlu0 %v759_v40, %s1316_s25  ;;  %274 = vrot.lane.b32.xlu2 %v1544_v52, %s1322_s10  ;;  %s1198_s10 = sshll.u32 %s1787_s12, 4  ;;  %s1199_s10 = int_to_ptr.hbm [resolvable:$true] %s1198_s10 }
 0x220   :  { %v346_v45 = vpop.permute.xlu2 %345 }
 0x221   :  { %766 = vrot.lane.b32.xlu1 %v760_v43, %s1316_s25 }
 0x226   :  { %339 = vrot.lane.b32.xlu0 %v1553_v4, %s1320_s29 }
 0x228   :  { %v348_v42 = vpop.permute.xlu2 %347 }
 0x229   :  { %341 = vrot.lane.b32.xlu1 %v1555_v6, %s1320_s29  ;;  %v352_v41 = vsel %vm67_vm0, %v346_v45, %v348_v42 }
 0x22a   :  { %360 = vst [vmem:[#allocation3 + $0x18] sm:$0xf0] %v352_v41  ;;  %v786_v41 = vld [vmem:[%s1779_s4] sm:$0xf] }
 0x230   :  { %v409_v44 = vpop.permute.xlu2 %408  ;;  %v279_v46 = vpop.permute.xlu0 %278 }
 0x231   :  { %v281_v47 = vpop.permute.xlu1 %280  ;;  %v285_v52 = vsel %vm282_vm11, %v1620_v39, %v279_v46 }
 0x232   :  { %v286_v48 = vsel %vm282_vm11, %v279_v46, %v281_v47  ;;  %293 = vst [vmem:[#allocation3 + $0x50] sm:$0xf] %v285_v52 }
 0x233   :  { %294 = vst [vmem:[#allocation3 + $0x18] sm:$0xf] %v286_v48 }
 0x238   :  { %v478_v49 = vpop.permute.xlu2 %477 }
 0x239   :  { %v1636_v50 = vpop.permute.xlu1 %343 }
 0x23a   :  { %v351_v4 = vsel %vm67_vm0, %v1636_v50, %v346_v45  ;;  %v790_v43 = vld [vmem:[#allocation3 + $0x18] sm:$0xff] }
 0x23b   :  { %359 = vst [vmem:[#allocation3 + $0x50] sm:$0xf0] %v351_v4 }
 0x240   :  { %v576_v6 = vpop.permute.xlu2 %575  ;;  %v411_v51 = vpop.permute.xlu0 %410 }
 0x241   :  { %v417_v53 = vsel %vm414_vm10, %v409_v44, %v411_v51 }
 0x242   :  { %425 = vst [vmem:[#allocation3 + $0x78] sm:$0xf] %v417_v53 }
 0x243   :  { %v407_v54 = vpop.permute.xlu1 %406 }
 0x244   :  { %v416_v55 = vsel %vm414_vm10, %v407_v54, %v409_v44 }
 0x245   :  { %424 = vst [vmem:[#allocation3 + $0x68] sm:$0xf] %v416_v55 }
 0x248   :  { %v572_v58 = vpop.permute.xlu2 %571  ;;  %v413_v59 = vpop.permute.xlu0 %412 }
 0x249   :  { %v418_v60 = vsel %vm414_vm10, %v411_v51, %v413_v59 }
 0x24a   :  { %426 = vst [vmem:[#allocation3 + $0x80] sm:$0xf] %v418_v60 }
 0x24b   :  { %v1643_v56 = vpop.permute.xlu1 %475 }
 0x24c   :  { %v484_v61 = vsel %vm481_vm9, %v1643_v56, %v478_v49 }
 0x24d   :  { %492 = vst [vmem:[#allocation3 + $0x78] sm:$0xf0] %v484_v61 }
 0x250   :  { %v709_v62 = vpop.permute.xlu2 %708  ;;  %v405_v63 = vpop.permute.xlu0 %404 }
 0x251   :  { %v415_v0 = vsel %vm414_vm10, %v405_v63, %v407_v54  ;;  %v789_v54 = vld [vmem:[#allocation3 + $0x50] sm:$0xff] }
 0x252   :  { %423 = vst [vmem:[#allocation3 + $0x30] sm:$0xf] %v415_v0 }
 0x253   :  { %v480_v1 = vpop.permute.xlu1 %479 }
 0x254   :  { %v485_v2 = vsel %vm481_vm9, %v478_v49, %v480_v1  ;;  %v793_v4 = vld [vmem:[#allocation3 + $0x78] sm:$0xff] }
 0x255   :  { %493 = vst [vmem:[#allocation3 + $0x80] sm:$0xf0] %v485_v2 }
 0x258   :  { %v638_v3 = vpop.permute.xlu2 %637  ;;  %v580_v5 = vpop.permute.xlu0 %579 }
 0x25b   :  { %v644_v7 = vpop.permute.xlu1 %643 }
 0x260   :  { %v705_v57 = vpop.permute.xlu2 %704  ;;  %v578_v8 = vpop.permute.xlu0 %577 }
 0x261   :  { %v583_v11 = vsel %vm447_vm8, %v576_v6, %v578_v8  ;;  %v584_v12 = vsel %vm447_vm8, %v578_v8, %v580_v5 }
 0x262   :  { %591 = vst [vmem:[#allocation3 + $0x28] sm:$0xf0] %v583_v11 }
 0x263   :  { %v642_v13 = vpop.permute.xlu1 %641  ;;  %592 = vst [vmem:[#allocation3 + $0x40] sm:$0xf0] %v584_v12 }
 0x264   :  { %v648_v14 = vsel %vm381_vm7, %v642_v13, %v644_v7 }
 0x265   :  { %656 = vst [vmem:[#allocation3 + $0x60] sm:$0xf] %v648_v14 }
 0x268   :  { %v771_v15 = vpop.permute.xlu2 %770  ;;  %v574_v16 = vpop.permute.xlu0 %573 }
 0x269   :  { %v581_v19 = vsel %vm447_vm8, %v572_v58, %v574_v16  ;;  %v582_v20 = vsel %vm447_vm8, %v574_v16, %v576_v6  ;;  %v797_v48 = vld [vmem:[#allocation3 + $0x28] sm:$0xff] }
 0x26a   :  { %589 = vst [vmem:[#allocation3 + $0x8] sm:$0xf0] %v581_v19  ;;  %v798_v22 = vld [vmem:[#allocation3 + $0x40] sm:$0xff] }
 0x26b   :  { %v636_v21 = vpop.permute.xlu1 %635  ;;  %590 = vst [vmem:[#allocation3 + $0x88] sm:$0xf0] %v582_v20 }
 0x26c   :  { %v645_v10 = vsel %vm381_vm7, %v636_v21, %v638_v3 }
 0x26d   :  { %653 = vst [vmem:[#allocation3 + $0x58] sm:$0xf] %v645_v10 }
 0x270   :  { %v472_v17 = vpop.permute.xlu2 %471  ;;  %v640_v18 = vpop.permute.xlu0 %639 }
 0x271   :  { %v646_v23 = vsel %vm381_vm7, %v638_v3, %v640_v18  ;;  %v647_v24 = vsel %vm381_vm7, %v640_v18, %v642_v13  ;;  %v795_v1 = vld [vmem:[#allocation3 + $0x8] sm:$0xff] }
 0x272   :  { %654 = vst [vmem:[#allocation3 + $0x10] sm:$0xf] %v646_v23  ;;  %v796_v0 = vld [vmem:[#allocation3 + $0x88] sm:$0xff] }
 0x273   :  { %v773_v26 = vpop.permute.xlu1 %772  ;;  %655 = vst [vmem:[#allocation3 + $0x98] sm:$0xf] %v647_v24 }
 0x274   :  { %v777_v27 = vsel %vm249_vm5, %v771_v15, %v773_v26 }
 0x275   :  { %785 = vst [vmem:[#allocation3 + $0x90] sm:$0xf] %v777_v27 }
 0x278   :  { %v275_v28 = vpop.permute.xlu2 %274  ;;  %v707_v29 = vpop.permute.xlu0 %706 }
 0x279   :  { %v284_v30 = vsel %vm282_vm11, %v275_v28, %v1620_v39  ;;  %v712_v31 = vsel %vm315_vm6, %v705_v57, %v707_v29  ;;  %v713_v32 = vsel %vm315_vm6, %v707_v29, %v709_v62  ;;  %v794_v39 = vld [vmem:[#allocation3 + $0x80] sm:$0xff] }
 0x27a   :  { %292 = vst [vmem:[#allocation3 + $0x38] sm:$0xf] %v284_v30 }
 0x27b   :  { %v703_v33 = vpop.permute.xlu1 %702  ;;  %720 = vst [vmem:[#allocation3 + $0x98] sm:$0xf0] %v712_v31 }
 0x27c   :  { %v711_v34 = vsel %vm315_vm6, %v703_v33, %v705_v57  ;;  %721 = vst [vmem:[#allocation3 + $0x60] sm:$0xf0] %v713_v32  ;;  %v806_v35 = vld [vmem:[#allocation3 + $0x90] sm:$0xf] }
 0x27d   :  { %719 = vst [vmem:[#allocation3 + $0x10] sm:$0xf0] %v711_v34  ;;  %1221 = vmatpush.msk.msrb.mxu3 %vm153_vm1, %v806_v35 }
 0x280   :  { %v701_v36 = vpop.permute.xlu0 %700 }
 0x281   :  { %v710_v25 = vsel %vm315_vm6, %v701_v36, %v703_v33 }
 0x282   :  { %718 = vst [vmem:[#allocation3 + $0x58] sm:$0xf0] %v710_v25  ;;  %v801_v52 = vld [vmem:[#allocation3 + $0x98] sm:$0xff] }
 0x283   :  { %v769_v37 = vpop.permute.xlu1 %768  ;;  %v802_v9 = vld [vmem:[#allocation3 + $0x60] sm:$0xff] }
 0x284   :  { %v776_v38 = vsel %vm249_vm5, %v769_v37, %v771_v15  ;;  %895 = vmatpush.msrb.mxu3 %v802_v9  ;;  %v800_v62 = vld [vmem:[#allocation3 + $0x10] sm:$0xff] }
 0x285   :  { %784 = vst [vmem:[#allocation3 + $0x70] sm:$0xf] %v776_v38 }
 0x286   :  { %896 = vmatpush.msrb.mxu3 %v798_v22 }
 0x288   :  { %897 = vmatpush.msrb.mxu3 %v794_v39  ;;  %v474_v40 = vpop.permute.xlu0 %473 }
 0x289   :  { %v482_v45 = vsel %vm481_vm9, %v472_v17, %v474_v40  ;;  %v483_v42 = vsel %vm481_vm9, %v474_v40, %v1643_v56  ;;  %v799_v63 = vld [vmem:[#allocation3 + $0x58] sm:$0xff]  ;;  %v903_v40 = vld [vmem:[%s1780_s5] sm:$0xf] }
 0x28a   :  { %898 = vmatpush.msrb.mxu3 %v790_v43  ;;  %490 = vst [vmem:[#allocation3 + $0x30] sm:$0xf0] %v482_v45 }
 0x28b   :  { %v273_v44 = vpop.permute.xlu1 %272  ;;  %491 = vst [vmem:[#allocation3 + $0x68] sm:$0xf0] %v483_v42  ;;  %1222 = vmatmul.msk.f32.vlgmr.msrb.gmra.mxu3 %vm807_vm12, %v786_v41 }
 0x28c   :  { %v283_v46 = vsel %vm282_vm11, %v273_v44, %v275_v28  ;;  %v805_v47 = vld [vmem:[#allocation3 + $0x70] sm:$0xf]  ;;  %v904_v44 = vld [vmem:[%s1781_s6] sm:$0xf] }
 0x28d   :  { %291 = vst [vmem:[#allocation3] sm:$0xf] %v283_v46  ;;  %1219 = vmatpush.msk.msrb.mxu2 %vm153_vm1, %v805_v47 }
 0x28f   :  { %875 = vmatpush.msrb.mxu2 %v801_v52 }
 0x290   :  { %v765_v49 = vpop.permute.xlu0 %764 }
 0x291   :  { %876 = vmatpush.msrb.mxu2 %v797_v48 }
 0x292   :  { %v792_v2 = vld [vmem:[#allocation3 + $0x68] sm:$0xff] }
 0x293   :  { %v767_v6 = vpop.permute.xlu1 %766  ;;  %877 = vmatpush.msrb.mxu2 %v793_v4 }
 0x294   :  { %v775_v51 = vsel %vm249_vm5, %v767_v6, %v769_v37  ;;  %v774_v53 = vsel %vm249_vm5, %v765_v49, %v767_v6 }
 0x295   :  { %783 = vst [vmem:[#allocation3 + $0x48] sm:$0xf] %v775_v51  ;;  %878 = vmatpush.msrb.mxu2 %v789_v54 }
 0x296   :  { %782 = vst [vmem:[#allocation3 + $0x20] sm:$0xf] %v774_v53  ;;  %1220 = vmatmul.msk.f32.vlgmr.msrb.gmra.mxu2 %vm807_vm12, %v786_v41 }
 0x298   :  { %v340_v55 = vpop.permute.xlu0 %339 }
 0x29b   :  { %v342_v58 = vpop.permute.xlu1 %341 }
 0x29c   :  { %v350_v59 = vsel %vm67_vm0, %v342_v58, %v1636_v50  ;;  %v349_v60 = vsel %vm67_vm0, %v340_v55, %v342_v58  ;;  %v804_v56 = vld [vmem:[#allocation3 + $0x48] sm:$0xf]  ;;  %v791_v50 = vld [vmem:[#allocation3 + $0x30] sm:$0xff]  ;;  %vm969_vm0 = vcmask 31744  }
 0x29d   :  { %358 = vst [vmem:[#allocation3 + $0x38] sm:$0xf0] %v350_v59  ;;  %v803_v61 = vld [vmem:[#allocation3 + $0x20] sm:$0xf]  ;;  %1217 = vmatpush.msk.msrb.mxu1 %vm153_vm1, %v804_v56 }
 0x29e   :  { %357 = vst [vmem:[#allocation3] sm:$0xf0] %v349_v60  ;;  %1215 = vmatpush.msk.msrb.mxu0 %vm153_vm1, %v803_v61  ;;  %v967_v61 = vld [vmem:[%s1782_s7] sm:$0xff] }
 0x29f   :  { %855 = vmatpush.msrb.mxu1 %v800_v62  ;;  %v968_v62 = vld [vmem:[%s1782_s7 + $0x8] sm:$0xff] }
 0x2a0   :  { %835 = vmatpush.msrb.mxu0 %v799_v63 }
 0x2a1   :  { %856 = vmatpush.msrb.mxu1 %v796_v0 }
 0x2a2   :  { %836 = vmatpush.msrb.mxu0 %v795_v1 }
 0x2a3   :  { %857 = vmatpush.msrb.mxu1 %v792_v2 }
 0x2a4   :  { %837 = vmatpush.msrb.mxu0 %v791_v50  ;;  %v788_v3 = vld [vmem:[#allocation3 + $0x38] sm:$0xff] }
 0x2a5   :  { %v787_v5 = vld [vmem:[#allocation3] sm:$0xff]  ;;  %858 = vmatpush.msrb.mxu1 %v788_v3 }
 0x2a6   :  { %838 = vmatpush.msrb.mxu0 %v787_v5  ;;  %1218 = vmatmul.msk.f32.vlgmr.msrb.gmra.mxu1 %vm807_vm12, %v786_v41 }
 0x2a7   :  { %1216 = vmatmul.msk.f32.vlgmr.msrb.gmra.mxu0 %vm807_vm12, %v786_v41 }
 0x30e   :  { %v900_v57 = vpop.f32.mrf.mxu3 }
 0x30f   :  { %v917_v20 = vmul.f32 %v900_v57, %v900_v57  ;;  %v910_v18 = vsel %vm153_vm1, %v900_v57, 0.0 }
 0x311   :  { %v923_v27 = vsel %vm153_vm1, %v917_v20, 0.0 }
 0x319   :  { %v880_v7 = vpop.f32.mrf.mxu2 }
 0x31a   :  { %v916_v11 = vmul.f32 %v880_v7, %v880_v7  ;;  %v908_v19 = vsel %vm153_vm1, %v880_v7, 0.0 }
 0x31c   :  { %v921_v23 = vsel %vm153_vm1, %v916_v11, 0.0 }
 0x323   :  { %v860_v8 = vpop.f32.mrf.mxu1 }
 0x324   :  { %v840_v12 = vpop.f32.mrf.mxu0  ;;  %v906_v13 = vsel %vm153_vm1, %v860_v8, 0.0  ;;  %v915_v14 = vmul.f32 %v860_v8, %v860_v8 }
 0x325   :  { %v905_v15 = vsel %vm153_vm1, %v840_v12, 0.0  ;;  %v914_v16 = vmul.f32 %v840_v12, %v840_v12 }
 0x326   :  { %v907_v21 = vadd.f32 %v906_v13, %v905_v15  ;;  %v919_v10 = vsel %vm153_vm1, %v915_v14, 0.0 }
 0x327   :  { %v918_v17 = vsel %vm153_vm1, %v914_v16, 0.0 }
 0x328   :  { %v909_v24 = vadd.f32 %v908_v19, %v907_v21  ;;  %v920_v26 = vadd.f32 %v919_v10, %v918_v17 }
 0x32a   :  { %v911_v28 = vadd.f32 %v910_v18, %v909_v24  ;;  %v922_v29 = vadd.f32 %v921_v23, %v920_v26 }
 0x32c   :  { %912 = vadd.xlane.f32.xlu2 %v911_v28  ;;  %v924_v30 = vadd.f32 %v923_v27, %v922_v29 }
 0x32e   :  { %925 = vadd.xlane.f32.xlu0 %v924_v30 }
 0x39f   :  { %v913_v31 = vpop.xlane.xlu2 %912 }
 0x3a0   :  { %v927_v32 = vmul.f32 0.001953125, %v913_v31 }
 0x3a1   :  { %v926_v33 = vpop.xlane.xlu0 %925 }
 0x3a2   :  { %v929_v34 = vmul.f32 %v927_v32, %v927_v32  ;;  %v928_v35 = vmul.f32 0.001953125, %v926_v33 }
 0x3a4   :  { %v930_v36 = vsub.f32 %v928_v35, %v929_v34 }
 0x3a6   :  { %v931_v25 = vadd.f32 1e-05, %v930_v36 }
 0x3a8   :  { %1254 = vrsqrt.f32 %v931_v25  ;;  %vm938_vm14 = vweird.f32 %v931_v25 }
 0x3ae   :  { %v1255_v37 = vpop.eup %1254 }
 0x3af   :  { %v933_v9 = vmul.f32 %v1255_v37, %v931_v25  ;;  %vm939_vm13 = vweird.f32 %v1255_v37 }
 0x3b0   :  { %vm940_vm15 = vmor %vm938_vm14, %vm939_vm13 }
 0x3b1   :  { %v934_v38 = vmul.f32 %v1255_v37, %v933_v9 }
 0x3b3   :  { %v935_v22 = vmul.f32 0.5, %v934_v38 }
 0x3b5   :  { %v936_v39 = vsub.f32 1.5, %v935_v22 }
 0x3b7   :  { %v937_v43 = vmul.f32 %v1255_v37, %v936_v39 }
 0x3b9   :  { %v941_v45 = vsel %vm940_vm15, %v1255_v37, %v937_v43 }
 0x3ba   :  { %v942_v42 = vmul.f32 %v941_v45, %v903_v40 }
 0x3bc   :  { %947 = vperm.xlu1 %1249, %v942_v42   ;;  %v943_v41 = vmul.f32 %v942_v42, %v927_v32 }
 0x3be   :  { %v944_v46 = vsub.f32 %v904_v44, %v943_v41 }
 0x3c4   :  { %956 = vperm.xlu1 %1249, %v944_v46   ;;  %v1080_v46 = vld [vmem:[%s1783_s8] sm:$0xff] }
 0x42e   :  { %v948_v47 = vpop.permute.xlu1 %947 }
 0x42f   :  { %v950_v52 = vmul.f32 %v948_v47, %v840_v12  ;;  %v951_v48 = vmul.f32 %v948_v47, %v860_v8  ;;  %v952_v49 = vmul.f32 %v948_v47, %v880_v7  ;;  %v953_v4 = vmul.f32 %v948_v47, %v900_v57 }
 0x436   :  { %v957_v6 = vpop.permute.xlu1 %956 }
 0x437   :  { %v959_v51 = vadd.f32 %v957_v6, %v950_v52  ;;  %v960_v53 = vadd.f32 %v957_v6, %v951_v48  ;;  %v961_v54 = vadd.f32 %v957_v6, %v952_v49  ;;  %v962_v55 = vadd.f32 %v957_v6, %v953_v4  ;;  %v1082_v49 = vld [vmem:[%s1784_s9] sm:$0xff] }
 0x439   :  { %v963_v58 = vmax.f32 %v959_v51, 0.0  ;;  %v964_v59 = vmax.f32 %v960_v53, 0.0  ;;  %v965_v60 = vmax.f32 %v961_v54, 0.0  ;;  %v966_v56 = vmax.f32 %v962_v55, 0.0 }
 0x43b   :  { %1223 = vmatpush.msk.msra.mxu0 %vm153_vm1, %v963_v58  ;;  %1226 = vmatpush.msk.msra.mxu1 %vm153_vm1, %v964_v59  ;;  %v1081_v59 = vld [vmem:[%s1783_s8 + $0x8] sm:$0xff]  ;;  %s1325_s8 = smov [#allocation7]  }
 0x43c   :  { %1229 = vmatpush.msk.msra.mxu2 %vm153_vm1, %v965_v60  ;;  %1232 = vmatpush.msk.msra.mxu3 %vm153_vm1, %v966_v56 }
 0x43d   :  { %1230 = vmatmul.msk.f32.vlgmr.msra.gmra.mxu2 %vm969_vm0, %v967_v61  ;;  %1233 = vmatmul.msk.f32.vlgmr.msra.gmra.mxu3 %vm969_vm0, %v967_v61 }
 0x43e   :  { %1224 = vmatmul.msk.f32.vlgmr.msra.gmra.mxu0 %vm969_vm0, %v967_v61  ;;  %1227 = vmatmul.msk.f32.vlgmr.msra.gmra.mxu1 %vm969_vm0, %v967_v61 }
 0x445   :  { %1231 = vmatmul.msk.f32.gmra.mxu2 %vm969_vm0, %v968_v62  ;;  %1234 = vmatmul.msk.f32.gmra.mxu3 %vm969_vm0, %v968_v62 }
 0x446   :  { %1225 = vmatmul.msk.f32.gmra.mxu0 %vm969_vm0, %v968_v62  ;;  %1228 = vmatmul.msk.f32.gmra.mxu1 %vm969_vm0, %v968_v62 }
 0x4bb   :  { %v1709_v63 = vpop.f32.mrf.mxu0  ;;  %v1711_v0 = vpop.f32.mrf.mxu1 }
 0x4bc   :  { %v1094_v1 = vmul.f32 %v1709_v63, %v1709_v63  ;;  %v1095_v2 = vmul.f32 %v1711_v0, %v1711_v0  ;;  %v1084_v50 = vadd.f32 %v1711_v0, %v1709_v63 }
 0x4be   :  { %v1102_v3 = vadd.f32 %v1095_v2, %v1094_v1  ;;  %v1083_v1 = vld [vmem:[%s1784_s9 + $0x8] sm:$0xff]  ;;  %s1196_s9 = sshll.u32 %s1325_s8, 4  ;;  %s1197_s9 = int_to_ptr.vmem [resolvable:$true] %s1196_s9 }
 0x4c0   :  { %v1719_v5 = vpop.f32.mrf.mxu2  ;;  %v1721_v7 = vpop.f32.mrf.mxu3 }
 0x4c1   :  { %v1096_v57 = vmul.f32 %v1719_v5, %v1719_v5  ;;  %v1085_v8 = vadd.f32 %v1084_v50, %v1719_v5  ;;  %v1097_v11 = vmul.f32 %v1721_v7, %v1721_v7 }
 0x4c3   :  { %v1086_v12 = vadd.f32 %v1085_v8, %v1721_v7  ;;  %v1729_v13 = vpop.f32.mrf.mxu0  ;;  %v1731_v14 = vpop.f32.mrf.mxu1  ;;  %v1103_v15 = vadd.f32 %v1102_v3, %v1096_v57 }
 0x4c4   :  { %v1098_v16 = vmul.f32 %v1729_v13, %v1729_v13  ;;  %v1089_v19 = vadd.f32 %v1731_v14, %v1729_v13  ;;  %v1099_v20 = vmul.f32 %v1731_v14, %v1731_v14 }
 0x4c5   :  { %1087 = vadd.xlane.f32.xlu1 %v1086_v12  ;;  %v1104_v21 = vadd.f32 %v1103_v15, %v1097_v11 }
 0x4c6   :  { %v1107_v18 = vadd.f32 %v1099_v20, %v1098_v16 }
 0x4c7   :  { %1105 = vadd.xlane.f32.xlu0 %v1104_v21 }
 0x4c8   :  { %v1739_v10 = vpop.f32.mrf.mxu2  ;;  %v1741_v17 = vpop.f32.mrf.mxu3 }
 0x4c9   :  { %v1090_v23 = vadd.f32 %v1089_v19, %v1739_v10  ;;  %v1100_v24 = vmul.f32 %v1739_v10, %v1739_v10  ;;  %v1101_v27 = vmul.f32 %v1741_v17, %v1741_v17 }
 0x4cb   :  { %v1091_v26 = vadd.f32 %v1090_v23, %v1741_v17  ;;  %v1108_v28 = vadd.f32 %v1107_v18, %v1100_v24 }
 0x4cd   :  { %1092 = vadd.xlane.f32.xlu2 %v1091_v26  ;;  %v1109_v29 = vadd.f32 %v1108_v28, %v1101_v27 }
 0x4d5   :  { %1110 = vadd.xlane.f32.xlu2 %v1109_v29 }
 0x538   :  { %v1088_v30 = vpop.xlane.xlu1 %1087 }
 0x539   :  { %v1112_v31 = vmul.f32 0.001953125, %v1088_v30 }
 0x53a   :  { %v1106_v32 = vpop.xlane.xlu0 %1105 }
 0x53b   :  { %v1116_v33 = vmul.f32 %v1112_v31, %v1112_v31  ;;  %v1114_v34 = vmul.f32 0.001953125, %v1106_v32 }
 0x53d   :  { %v1118_v35 = vsub.f32 %v1114_v34, %v1116_v33 }
 0x53f   :  { %v1120_v36 = vadd.f32 1e-05, %v1118_v35 }
 0x540   :  { %v1093_v25 = vpop.xlane.xlu2 %1092 }
 0x541   :  { %1256 = vrsqrt.f32 %v1120_v36  ;;  %v1113_v37 = vmul.f32 0.001953125, %v1093_v25  ;;  %vm1128_vm2 = vweird.f32 %v1120_v36 }
 0x543   :  { %v1117_v38 = vmul.f32 %v1113_v37, %v1113_v37 }
 0x547   :  { %v1257_v9 = vpop.eup %1256 }
 0x548   :  { %v1123_v22 = vmul.f32 %v1257_v9, %v1120_v36  ;;  %v1111_v39 = vpop.xlane.xlu2 %1110  ;;  %vm1129_vm1 = vweird.f32 %v1257_v9 }
 0x549   :  { %v1115_v40 = vmul.f32 0.001953125, %v1111_v39  ;;  %vm1130_vm3 = vmor %vm1128_vm2, %vm1129_vm1 }
 0x54a   :  { %v1124_v43 = vmul.f32 %v1257_v9, %v1123_v22 }
 0x54b   :  { %v1119_v45 = vsub.f32 %v1115_v40, %v1117_v38 }
 0x54c   :  { %v1125_v42 = vmul.f32 0.5, %v1124_v43 }
 0x54d   :  { %v1121_v41 = vadd.f32 1e-05, %v1119_v45 }
 0x54e   :  { %v1126_v44 = vsub.f32 1.5, %v1125_v42 }
 0x54f   :  { %1258 = vrsqrt.f32 %v1121_v41  ;;  %vm1138_vm5 = vweird.f32 %v1121_v41 }
 0x550   :  { %v1127_v47 = vmul.f32 %v1257_v9, %v1126_v44 }
 0x552   :  { %v1131_v52 = vsel %vm1130_vm3, %v1257_v9, %v1127_v47 }
 0x553   :  { %v1142_v48 = vmul.f32 %v1131_v52, %v1080_v46 }
 0x555   :  { %v1259_v4 = vpop.eup %1258  ;;  %1150 = vperm.xlu0 %1250, %v1142_v48   ;;  %v1144_v6 = vmul.f32 %v1142_v48, %v1112_v31 }
 0x556   :  { %v1133_v51 = vmul.f32 %v1259_v4, %v1121_v41  ;;  %vm1139_vm4 = vweird.f32 %v1259_v4 }
 0x557   :  { %v1146_v53 = vsub.f32 %v1082_v49, %v1144_v6  ;;  %vm1140_vm6 = vmor %vm1138_vm5, %vm1139_vm4 }
 0x558   :  { %v1134_v54 = vmul.f32 %v1259_v4, %v1133_v51 }
 0x559   :  { %1168 = vperm.xlu1 %1249, %v1146_v53  }
 0x55a   :  { %v1135_v55 = vmul.f32 0.5, %v1134_v54 }
 0x55c   :  { %v1136_v58 = vsub.f32 1.5, %v1135_v55 }
 0x55e   :  { %v1137_v60 = vmul.f32 %v1259_v4, %v1136_v58 }
 0x560   :  { %v1141_v56 = vsel %vm1140_vm6, %v1259_v4, %v1137_v60 }
 0x561   :  { %v1143_v61 = vmul.f32 %v1141_v56, %v1081_v59 }
 0x563   :  { %1155 = vperm.xlu2 %1251, %v1143_v61   ;;  %v1145_v62 = vmul.f32 %v1143_v61, %v1113_v37 }
 0x565   :  { %v1147_v2 = vsub.f32 %v1083_v1, %v1145_v62 }
 0x56b   :  { %1173 = vperm.xlu2 %1251, %v1147_v2  }
 0x5bd   :  { %v1156_v50 = vpop.permute.xlu2 %1155 }
 0x5be   :  { %v1162_v3 = vmul.f32 %v1156_v50, %v1729_v13  ;;  %v1163_v57 = vmul.f32 %v1156_v50, %v1731_v14  ;;  %v1164_v8 = vmul.f32 %v1156_v50, %v1739_v10  ;;  %v1165_v11 = vmul.f32 %v1156_v50, %v1741_v17 }
 0x5c5   :  { %v1174_v12 = vpop.permute.xlu2 %1173 }
 0x5c6   :  { %v1180_v15 = vadd.f32 %v1174_v12, %v1162_v3  ;;  %v1181_v16 = vadd.f32 %v1174_v12, %v1163_v57  ;;  %v1182_v19 = vadd.f32 %v1174_v12, %v1164_v8  ;;  %v1183_v20 = vadd.f32 %v1174_v12, %v1165_v11 }
 0x5c7   :  { %v1151_v21 = vpop.permute.xlu0 %1150 }
 0x5c8   :  { %1188 = vst [vmem:[#allocation7 + $0x20] sm:$0xff] %v1180_v15  ;;  %v1158_v18 = vmul.f32 %v1151_v21, %v1709_v63  ;;  %v1159_v23 = vmul.f32 %v1151_v21, %v1711_v0  ;;  %v1160_v13 = vmul.f32 %v1151_v21, %v1719_v5  ;;  %v1161_v14 = vmul.f32 %v1151_v21, %v1721_v7 }
 0x5c9   :  { %1189 = vst [vmem:[#allocation7 + $0x28] sm:$0xff] %v1181_v16 }
 0x5ca   :  { %1190 = vst [vmem:[#allocation7 + $0x30] sm:$0xff] %v1182_v19 }
 0x5cb   :  { %1191 = vst [vmem:[#allocation7 + $0x38] sm:$0xff] %v1183_v20  ;;  %v1169_v10 = vpop.permute.xlu1 %1168 }
 0x5cc   :  { %v1176_v17 = vadd.f32 %v1169_v10, %v1158_v18  ;;  %v1177_v24 = vadd.f32 %v1169_v10, %v1159_v23  ;;  %v1178_v26 = vadd.f32 %v1169_v10, %v1160_v13  ;;  %v1179_v27 = vadd.f32 %v1169_v10, %v1161_v14 }
 0x5ce   :  { %1184 = vst [vmem:[#allocation7] sm:$0xff] %v1176_v17 }
 0x5cf   :  { %1185 = vst [vmem:[#allocation7 + $0x8] sm:$0xff] %v1177_v24 }
 0x5d0   :  { %1186 = vst [vmem:[#allocation7 + $0x10] sm:$0xff] %v1178_v26 }
 0x5d1   :  { %1187 = vst [vmem:[#allocation7 + $0x18] sm:$0xff] %v1179_v27 }
 0x5d2   :  { %1204 = dma.vmem_to_hbm [thread:$0]  %s1197_s9, 1024, %s1199_s10, [#allocation6], %s1313_s26, %s1313_s26, %s1314_s27  }
 0x5d3   :  { %1310 = dma.done.wait [#allocation6], 1024  }
 0x5d4   :  { %1311 = vsyncadd [#allocation6], 4294966272 }
 0x5d5   :  { %1209 = vsyncpa [#allocation5], 1 }
 0x5d6   :  { %1210 = vsyncpa [#allocation6], 1 }

</bundles_post_ra>
